<compile_context>
chip_gen: v7x
topology: tpu7x:2x2x1
jax: 0.10.0
libtpu: 0.0.40
codegen_flags: <defaults>
</compile_context>

<pallas_src>
import functools

import jax
import jax.numpy as jnp
from jax import lax
from jax.experimental import pallas as pl
from jax.experimental.pallas import tpu as pltpu

K5 = 5  # conv kernel size


# ----------------------------------------------------------------------------
# Fused LeNet kernel (Bt images per grid step, straight-line, 20 matmuls)
# ----------------------------------------------------------------------------
def _lenet_kernel(x_ref, w1_ref, b1_ref, ph1_ref, pw1_ref,
                  w2_ref, b2_ref, ph2_ref, pw2_ref,
                  w3_ref, b3_ref, w45_ref, b45_ref, out_ref):
    f32, bf16 = jnp.float32, jnp.bfloat16

    def banded_conv(lhs_fn, w_ref, b_ref):
        """relu(sum_di lhs(di) @ W[di] + b): 5 matmuls, f32 accumulation."""
        acc = jnp.dot(lhs_fn(0), w_ref[0], preferred_element_type=f32)
        for di in range(1, K5):
            acc = acc + jnp.dot(lhs_fn(di), w_ref[di],
                                preferred_element_type=f32)
        return jnp.maximum(acc + b_ref[...], 0.0)

    def avgpool(a_f32, ph_ref, pw_ref):
        """2x2/stride-2 pool as two matmuls (row pairs, then column pairs)."""
        s = jnp.dot(ph_ref[...], a_f32.astype(bf16),
                    preferred_element_type=f32)
        return jnp.dot(s.astype(bf16), pw_ref[...],
                       preferred_element_type=f32)

    # conv1 + ReLU : (Bt*32, 32) image slab -> (Bt*32-4, 256)  [cols = w*6+n]
    n1 = x_ref.shape[0] - (K5 - 1)
    a1 = banded_conv(lambda di: x_ref[di:di + n1, :], w1_ref, b1_ref)

    # pool1 : -> (Bt*14, 128)  [cols = w*6+n]
    p1 = avgpool(a1, ph1_ref, pw1_ref)

    # conv2 + ReLU : -> (Bt*14-4, 256)  [cols = w*16+co]
    n2 = p1.shape[0] - (K5 - 1)
    a2 = banded_conv(lambda di: p1[di:di + n2, :].astype(bf16),
                     w2_ref, b2_ref)

    # pool2 : -> (Bt*5, 128)  [cols = dj*16+ci]
    p2 = avgpool(a2, ph2_ref, pw2_ref)

    # conv3 + ReLU : -> (Bt*5-4, 128)  [cols = conv3 channel n, 120 valid]
    n3 = p2.shape[0] - (K5 - 1)
    h3 = banded_conv(lambda di: p2[di:di + n3, :].astype(bf16),
                     w3_ref, b3_ref)

    # fused fc1 + fc2 (no ReLU between, folded at weight-prep time)
    out_ref[0] = (jnp.dot(h3.astype(bf16), w45_ref[...],
                          preferred_element_type=f32) + b45_ref[...])


# ----------------------------------------------------------------------------
# Host-side one-time weight repack into MXU-ready banded / flattened layouts
# ----------------------------------------------------------------------------
def prepare_lenet_params(params, block_batch=1):
    Bt = block_batch
    f32, bf16 = jnp.float32, jnp.bfloat16
    assert params["l2_w"].shape[0] <= 128, "output_classes must be <= 128"

    d = jnp.arange(K5)

    # conv1 banded weight: W1B[di, j, w*6+n] = w1[n, 0, di, j-w] (0<=j-w<5)
    w1 = params["conv1_w"].astype(f32)[:, 0]                       # (6,5,5)
    j = jnp.arange(32)
    w_ = jnp.arange(28)
    oh1 = (j[:, None, None] == w_[None, :, None] + d[None, None, :]).astype(f32)
    w1b = jnp.einsum("jwd,nad->ajwn", oh1, w1).reshape(K5, 32, 28 * 6)
    w1b = jnp.pad(w1b, ((0, 0), (0, 0), (0, 256 - 168))).astype(bf16)

    # conv2 banded weight: W2B[di, wi*6+ci, w*16+co] = w2[co, ci, di, wi-w]
    w2 = params["conv2_w"].astype(f32)                             # (16,6,5,5)
    wi = jnp.arange(14)
    w10 = jnp.arange(10)
    oh2 = (wi[:, None, None] == w10[None, :, None] + d[None, None, :]).astype(f32)
    w2b = jnp.einsum("xwd,ocad->axcwo", oh2, w2).reshape(K5, 84, 160)
    w2b = jnp.pad(w2b, ((0, 0), (0, 128 - 84), (0, 256 - 160))).astype(bf16)

    # conv3 weight: W3B[di, dj*16+ci, n] = w3[n, ci, di, dj]
    w3 = params["conv3_w"].astype(f32)                             # (120,16,5,5)
    w3b = jnp.transpose(w3, (2, 3, 1, 0)).reshape(K5, 80, 120)
    w3b = jnp.pad(w3b, ((0, 0), (0, 128 - 80), (0, 128 - 120))).astype(bf16)

    # fused fc1+fc2: y = h3 @ (W4^T W5^T) + (b4 W5^T + b5)
    w4t = params["l1_w"].astype(f32).T                             # (120,84)
    w5t = params["l2_w"].astype(f32).T                             # (84,C)
    w45 = w4t @ w5t                                                # (120,C)
    c_out = w45.shape[1]
    w45 = jnp.pad(w45, ((0, 128 - 120), (0, 128 - c_out))).astype(bf16)
    b45 = params["l1_b"].astype(f32) @ w5t + params["l2_b"].astype(f32)
    b45 = jnp.pad(b45, (0, 128 - c_out)).reshape(1, 128)

    # biases in the flattened (w, channel) layouts (kept f32)
    b1f = jnp.pad(jnp.tile(params["conv1_b"].astype(f32), 28),
                  (0, 256 - 168)).reshape(1, 256)
    b2f = jnp.pad(jnp.tile(params["conv2_b"].astype(f32), 10),
                  (0, 256 - 160)).reshape(1, 256)
    b3f = jnp.pad(params["conv3_b"].astype(f32), (0, 128 - 120)).reshape(1, 128)

    # pooling matrices (block-diagonal across the Bt stacked images)
    def pool_rows(rows_per_img, out_per_img, acc_rows):
        r = jnp.arange(Bt * out_per_img)
        b = r // out_per_img
        i = r % out_per_img
        base = b * rows_per_img + 2 * i
        c = jnp.arange(acc_rows)
        m = (c[None, :] == base[:, None]) | (c[None, :] == base[:, None] + 1)
        return m.astype(bf16)

    ph1 = pool_rows(32, 14, Bt * 32 - 4)
    ph2 = pool_rows(14, 5, Bt * 14 - 4)

    def pool_cols(n_ch, w_in, width_in):
        k = jnp.arange(width_in)
        w = k // n_ch
        c = k % n_ch
        tgt = (w // 2) * n_ch + c
        valid = k < w_in * n_ch
        col = jnp.arange(128)
        m = valid[:, None] & (col[None, :] == tgt[:, None])
        return jnp.where(m, 0.25, 0.0).astype(bf16)

    pw1 = pool_cols(6, 28, 256)
    pw2 = pool_cols(16, 10, 256)

    return dict(w1b=w1b, b1=b1f, ph1=ph1, pw1=pw1,
                w2b=w2b, b2=b2f, ph2=ph2, pw2=pw2,
                w3b=w3b, b3=b3f, w45=w45, b45=b45)


# ----------------------------------------------------------------------------
# Forward wrapper
# ----------------------------------------------------------------------------
@functools.partial(jax.jit, static_argnames=("output_classes", "block_batch"))
def lenet_forward(kparams, x, *, output_classes, block_batch=1):
    """x: (B, 1, 32, 32) float32 -> (B, output_classes) float32."""
    B = x.shape[0]
    Bt = block_batch
    assert B % Bt == 0, "batch must be divisible by block_batch"
    G = B // Bt
    n3 = Bt * 5 - 4

    # Images stacked along the sublane/M dim, no channel padding, bf16 DMA.
    xs = x.reshape(B * 32, 32).astype(jnp.bfloat16)

    def full_spec(a):
        nd = a.ndim
        return pl.BlockSpec(a.shape, lambda *_: (0,) * nd)

    kp = kparams
    out = pl.pallas_call(
        _lenet_kernel,
        out_shape=jax.ShapeDtypeStruct((G, n3, 128), jnp.float32),
        grid_spec=pltpu.PrefetchScalarGridSpec(
            num_scalar_prefetch=0,
            grid=(G,),
            in_specs=[
                pl.BlockSpec((Bt * 32, 32), lambda g: (g, 0)),   # image slab
                full_spec(kp["w1b"]), full_spec(kp["b1"]),
                full_spec(kp["ph1"]), full_spec(kp["pw1"]),
                full_spec(kp["w2b"]), full_spec(kp["b2"]),
                full_spec(kp["ph2"]), full_spec(kp["pw2"]),
                full_spec(kp["w3b"]), full_spec(kp["b3"]),
                full_spec(kp["w45"]), full_spec(kp["b45"]),
            ],
            out_specs=pl.BlockSpec((1, n3, 128), lambda g: (g, 0, 0)),
        ),
        compiler_params=pltpu.CompilerParams(
            dimension_semantics=("parallel",),
        ),
    )(xs, kp["w1b"], kp["b1"], kp["ph1"], kp["pw1"],
      kp["w2b"], kp["b2"], kp["ph2"], kp["pw2"],
      kp["w3b"], kp["b3"], kp["w45"], kp["b45"])

    # Row b_local*5 of each block holds image (g*Bt + b_local)'s logits.
    logits = out[:, ::5, :].reshape(B, 128)
    return logits[:, :output_classes]


# ----------------------------------------------------------------------------
# Parameter init (deterministic, synthetic) + pure-JAX reference
# ----------------------------------------------------------------------------
def init_lenet_params(key, output_classes):
    def uniform(key, shape, fan_in):
        bound = 1.0 / jnp.sqrt(jnp.float32(fan_in))
        return jax.random.uniform(key, shape, dtype=jnp.float32,
                                  minval=-bound, maxval=bound)

    keys = jax.random.split(key, 10)
    return {
        "conv1_w": uniform(keys[0], (6, 1, 5, 5), 1 * 5 * 5),
        "conv1_b": uniform(keys[1], (6,), 1 * 5 * 5),
        "conv2_w": uniform(keys[2], (16, 6, 5, 5), 6 * 5 * 5),
        "conv2_b": uniform(keys[3], (16,), 6 * 5 * 5),
        "conv3_w": uniform(keys[4], (120, 16, 5, 5), 16 * 5 * 5),
        "conv3_b": uniform(keys[5], (120,), 16 * 5 * 5),
        "l1_w": uniform(keys[6], (84, 120), 120),
        "l1_b": uniform(keys[7], (84,), 120),
        "l2_w": uniform(keys[8], (output_classes, 84), 84),
        "l2_b": uniform(keys[9], (output_classes,), 84),
    }


def lenet_reference(params, x):
    """Pure-JAX (XLA, f32) reference with the same semantics as the module."""
    def conv_relu(x, w, b):
        y = lax.conv_general_dilated(x, w, (1, 1), "VALID",
                                     dimension_numbers=("NCHW", "OIHW", "NCHW"))
        return jax.nn.relu(y + b[None, :, None, None])

    def pool(x):
        return lax.reduce_window(x, 0.0, lax.add,
                                 (1, 1, 2, 2), (1, 1, 2, 2), "VALID") * 0.25

    x = pool(conv_relu(x, params["conv1_w"], params["conv1_b"]))
    x = pool(conv_relu(x, params["conv2_w"], params["conv2_b"]))
    x = conv_relu(x, params["conv3_w"], params["conv3_b"])
    x = x.reshape(x.shape[0], -1)
    x = x @ params["l1_w"].T + params["l1_b"]
    x = x @ params["l2_w"].T + params["l2_b"]
    return x


if __name__ == "__main__":
    key = jax.random.PRNGKey(0)
    k_params, k_x = jax.random.split(key)

    output_classes = 10
    params = init_lenet_params(k_params, output_classes)

    # Config 1: batch=2, one image per grid step (grid=2 keeps both v7x TCs busy).
    x = jax.random.normal(k_x, (2, 1, 32, 32), dtype=jnp.float32)
    kp1 = prepare_lenet_params(params, block_batch=1)
    out1 = lenet_forward(kp1, x, output_classes=output_classes, block_batch=1)
    out1 = jax.block_until_ready(out1)
    assert out1.shape == (2, output_classes), out1.shape
    assert out1.dtype == jnp.float32
    ref1 = lenet_reference(params, x)
    err1 = float(jnp.max(jnp.abs(out1 - ref1)))
    assert jnp.allclose(out1, ref1, atol=2e-2, rtol=2e-2), err1

    # Config 2: 2 images per grid step (M-stacked batched path).
    x4 = jax.random.normal(jax.random.PRNGKey(1), (4, 1, 32, 32),
                           dtype=jnp.float32)
    kp2 = prepare_lenet_params(params, block_batch=2)
    out2 = lenet_forward(kp2, x4, output_classes=output_classes, block_batch=2)
    out2 = jax.block_until_ready(out2)
    assert out2.shape == (4, output_classes), out2.shape
    ref2 = lenet_reference(params, x4)
    err2 = float(jnp.max(jnp.abs(out2 - ref2)))
    assert jnp.allclose(out2, ref2, atol=2e-2, rtol=2e-2), err2

    print("KERNEL_OK")
</pallas_src>

<mosaic_0001>
module attributes {stable_mosaic.version = 11 : i64} {
  func.func @_lenet_kernel(%arg0: i32, %arg1: memref<32x32xbf16, #tpu.memory_space<vmem>>, %arg2: memref<5x32x256xbf16, #tpu.memory_space<vmem>>, %arg3: memref<1x256xf32, #tpu.memory_space<vmem>>, %arg4: memref<14x28xbf16, #tpu.memory_space<vmem>>, %arg5: memref<256x128xbf16, #tpu.memory_space<vmem>>, %arg6: memref<5x128x256xbf16, #tpu.memory_space<vmem>>, %arg7: memref<1x256xf32, #tpu.memory_space<vmem>>, %arg8: memref<5x10xbf16, #tpu.memory_space<vmem>>, %arg9: memref<256x128xbf16, #tpu.memory_space<vmem>>, %arg10: memref<5x128x128xbf16, #tpu.memory_space<vmem>>, %arg11: memref<1x128xf32, #tpu.memory_space<vmem>>, %arg12: memref<128x128xbf16, #tpu.memory_space<vmem>>, %arg13: memref<1x128xf32, #tpu.memory_space<vmem>>, %arg14: memref<1x1x128xf32, #tpu.memory_space<vmem>>) attributes {dimension_semantics = [#tpu.dimension_semantics<parallel>], iteration_bounds = array<i64: 2>, scalar_prefetch = 0 : i64, scratch_operands = 0 : i64, tpu.core_type = #tpu.core_type<tc>, window_params = [{transform_indices = @transform_0, window_bounds = array<i64: 32, 32>}, {pipeline_mode = #tpu.pipeline_mode<synchronous>, transform_indices = @transform_1, window_bounds = array<i64: 5, 32, 256>}, {pipeline_mode = #tpu.pipeline_mode<synchronous>, transform_indices = @transform_2, window_bounds = array<i64: 1, 256>}, {pipeline_mode = #tpu.pipeline_mode<synchronous>, transform_indices = @transform_3, window_bounds = array<i64: 14, 28>}, {pipeline_mode = #tpu.pipeline_mode<synchronous>, transform_indices = @transform_4, window_bounds = array<i64: 256, 128>}, {pipeline_mode = #tpu.pipeline_mode<synchronous>, transform_indices = @transform_5, window_bounds = array<i64: 5, 128, 256>}, {pipeline_mode = #tpu.pipeline_mode<synchronous>, transform_indices = @transform_6, window_bounds = array<i64: 1, 256>}, {pipeline_mode = #tpu.pipeline_mode<synchronous>, transform_indices = @transform_7, window_bounds = array<i64: 5, 10>}, {pipeline_mode = #tpu.pipeline_mode<synchronous>, transform_indices = @transform_8, window_bounds = array<i64: 256, 128>}, {pipeline_mode = #tpu.pipeline_mode<synchronous>, transform_indices = @transform_9, window_bounds = array<i64: 5, 128, 128>}, {pipeline_mode = #tpu.pipeline_mode<synchronous>, transform_indices = @transform_10, window_bounds = array<i64: 1, 128>}, {pipeline_mode = #tpu.pipeline_mode<synchronous>, transform_indices = @transform_11, window_bounds = array<i64: 128, 128>}, {pipeline_mode = #tpu.pipeline_mode<synchronous>, transform_indices = @transform_12, window_bounds = array<i64: 1, 128>}, {transform_indices = @transform_13, window_bounds = array<i64: 1, 1, 128>}]} {
    %c0 = arith.constant 0 : index
    %c0_0 = arith.constant 0 : index
    %0 = vector.load %arg1[%c0, %c0_0] : memref<32x32xbf16, #tpu.memory_space<vmem>>, vector<28x32xbf16>
    %c0_1 = arith.constant 0 : index
    %c0_2 = arith.constant 0 : index
    %c0_3 = arith.constant 0 : index
    %1 = vector.load %arg2[%c0_1, %c0_2, %c0_3] : memref<5x32x256xbf16, #tpu.memory_space<vmem>>, vector<1x32x256xbf16>
    %2 = vector.shape_cast %1 : vector<1x32x256xbf16> to vector<32x256xbf16>
    %cst = arith.constant dense<0.000000e+00> : vector<28x256xf32>
    %3 = tpu.matmul %0, %2, %cst {dimension_numbers = #tpu.dot_dimension_numbers<[1], [0], [0], [1], [0, 0, 1, 1], [], []>} : vector<28x32xbf16>, vector<32x256xbf16>, vector<28x256xf32> -> vector<28x256xf32>
    %c1 = arith.constant 1 : index
    %c0_4 = arith.constant 0 : index
    %4 = vector.load %arg1[%c1, %c0_4] : memref<32x32xbf16, #tpu.memory_space<vmem>>, vector<28x32xbf16>
    %c1_5 = arith.constant 1 : index
    %c0_6 = arith.constant 0 : index
    %c0_7 = arith.constant 0 : index
    %5 = vector.load %arg2[%c1_5, %c0_6, %c0_7] : memref<5x32x256xbf16, #tpu.memory_space<vmem>>, vector<1x32x256xbf16>
    %6 = vector.shape_cast %5 : vector<1x32x256xbf16> to vector<32x256xbf16>
    %cst_8 = arith.constant dense<0.000000e+00> : vector<28x256xf32>
    %7 = tpu.matmul %4, %6, %cst_8 {dimension_numbers = #tpu.dot_dimension_numbers<[1], [0], [0], [1], [0, 0, 1, 1], [], []>} : vector<28x32xbf16>, vector<32x256xbf16>, vector<28x256xf32> -> vector<28x256xf32>
    %8 = arith.addf %3, %7 : vector<28x256xf32>
    %c2 = arith.constant 2 : index
    %c0_9 = arith.constant 0 : index
    %9 = vector.load %arg1[%c2, %c0_9] : memref<32x32xbf16, #tpu.memory_space<vmem>>, vector<28x32xbf16>
    %c2_10 = arith.constant 2 : index
    %c0_11 = arith.constant 0 : index
    %c0_12 = arith.constant 0 : index
    %10 = vector.load %arg2[%c2_10, %c0_11, %c0_12] : memref<5x32x256xbf16, #tpu.memory_space<vmem>>, vector<1x32x256xbf16>
    %11 = vector.shape_cast %10 : vector<1x32x256xbf16> to vector<32x256xbf16>
    %cst_13 = arith.constant dense<0.000000e+00> : vector<28x256xf32>
    %12 = tpu.matmul %9, %11, %cst_13 {dimension_numbers = #tpu.dot_dimension_numbers<[1], [0], [0], [1], [0, 0, 1, 1], [], []>} : vector<28x32xbf16>, vector<32x256xbf16>, vector<28x256xf32> -> vector<28x256xf32>
    %13 = arith.addf %8, %12 : vector<28x256xf32>
    %c3 = arith.constant 3 : index
    %c0_14 = arith.constant 0 : index
    %14 = vector.load %arg1[%c3, %c0_14] : memref<32x32xbf16, #tpu.memory_space<vmem>>, vector<28x32xbf16>
    %c3_15 = arith.constant 3 : index
    %c0_16 = arith.constant 0 : index
    %c0_17 = arith.constant 0 : index
    %15 = vector.load %arg2[%c3_15, %c0_16, %c0_17] : memref<5x32x256xbf16, #tpu.memory_space<vmem>>, vector<1x32x256xbf16>
    %16 = vector.shape_cast %15 : vector<1x32x256xbf16> to vector<32x256xbf16>
    %cst_18 = arith.constant dense<0.000000e+00> : vector<28x256xf32>
    %17 = tpu.matmul %14, %16, %cst_18 {dimension_numbers = #tpu.dot_dimension_numbers<[1], [0], [0], [1], [0, 0, 1, 1], [], []>} : vector<28x32xbf16>, vector<32x256xbf16>, vector<28x256xf32> -> vector<28x256xf32>
    %18 = arith.addf %13, %17 : vector<28x256xf32>
    %c4 = arith.constant 4 : index
    %c0_19 = arith.constant 0 : index
    %19 = vector.load %arg1[%c4, %c0_19] : memref<32x32xbf16, #tpu.memory_space<vmem>>, vector<28x32xbf16>
    %c4_20 = arith.constant 4 : index
    %c0_21 = arith.constant 0 : index
    %c0_22 = arith.constant 0 : index
    %20 = vector.load %arg2[%c4_20, %c0_21, %c0_22] : memref<5x32x256xbf16, #tpu.memory_space<vmem>>, vector<1x32x256xbf16>
    %21 = vector.shape_cast %20 : vector<1x32x256xbf16> to vector<32x256xbf16>
    %cst_23 = arith.constant dense<0.000000e+00> : vector<28x256xf32>
    %22 = tpu.matmul %19, %21, %cst_23 {dimension_numbers = #tpu.dot_dimension_numbers<[1], [0], [0], [1], [0, 0, 1, 1], [], []>} : vector<28x32xbf16>, vector<32x256xbf16>, vector<28x256xf32> -> vector<28x256xf32>
    %23 = arith.addf %18, %22 : vector<28x256xf32>
    %c0_24 = arith.constant 0 : index
    %c0_25 = arith.constant 0 : index
    %24 = vector.load %arg3[%c0_24, %c0_25] : memref<1x256xf32, #tpu.memory_space<vmem>>, vector<1x256xf32>
    %25 = vector.broadcast %24 : vector<1x256xf32> to vector<28x256xf32>
    %26 = arith.addf %23, %25 : vector<28x256xf32>
    %cst_26 = arith.constant 0.000000e+00 : f32
    %27 = vector.broadcast %cst_26 : f32 to vector<28x256xf32>
    %28 = arith.maximumf %26, %27 : vector<28x256xf32>
    %c0_27 = arith.constant 0 : index
    %c0_28 = arith.constant 0 : index
    %29 = vector.load %arg4[%c0_27, %c0_28] : memref<14x28xbf16, #tpu.memory_space<vmem>>, vector<14x28xbf16>
    %30 = arith.truncf %28 : vector<28x256xf32> to vector<28x256xbf16>
    %cst_29 = arith.constant dense<0.000000e+00> : vector<14x256xf32>
    %31 = tpu.matmul %29, %30, %cst_29 {dimension_numbers = #tpu.dot_dimension_numbers<[1], [0], [0], [1], [0, 0, 1, 1], [], []>} : vector<14x28xbf16>, vector<28x256xbf16>, vector<14x256xf32> -> vector<14x256xf32>
    %32 = arith.truncf %31 : vector<14x256xf32> to vector<14x256xbf16>
    %c0_30 = arith.constant 0 : index
    %c0_31 = arith.constant 0 : index
    %33 = vector.load %arg5[%c0_30, %c0_31] : memref<256x128xbf16, #tpu.memory_space<vmem>>, vector<256x128xbf16>
    %cst_32 = arith.constant dense<0.000000e+00> : vector<14x128xf32>
    %34 = tpu.matmul %32, %33, %cst_32 {dimension_numbers = #tpu.dot_dimension_numbers<[1], [0], [0], [1], [0, 0, 1, 1], [], []>} : vector<14x256xbf16>, vector<256x128xbf16>, vector<14x128xf32> -> vector<14x128xf32>
    %35 = vector.extract_strided_slice %34 {offsets = [0, 0], sizes = [10, 128], strides = [1, 1]} : vector<14x128xf32> to vector<10x128xf32>
    %36 = arith.truncf %35 : vector<10x128xf32> to vector<10x128xbf16>
    %c0_33 = arith.constant 0 : index
    %c0_34 = arith.constant 0 : index
    %c0_35 = arith.constant 0 : index
    %37 = vector.load %arg6[%c0_33, %c0_34, %c0_35] : memref<5x128x256xbf16, #tpu.memory_space<vmem>>, vector<1x128x256xbf16>
    %38 = vector.shape_cast %37 : vector<1x128x256xbf16> to vector<128x256xbf16>
    %cst_36 = arith.constant dense<0.000000e+00> : vector<10x256xf32>
    %39 = tpu.matmul %36, %38, %cst_36 {dimension_numbers = #tpu.dot_dimension_numbers<[1], [0], [0], [1], [0, 0, 1, 1], [], []>} : vector<10x128xbf16>, vector<128x256xbf16>, vector<10x256xf32> -> vector<10x256xf32>
    %40 = vector.extract_strided_slice %34 {offsets = [1, 0], sizes = [10, 128], strides = [1, 1]} : vector<14x128xf32> to vector<10x128xf32>
    %41 = arith.truncf %40 : vector<10x128xf32> to vector<10x128xbf16>
    %c1_37 = arith.constant 1 : index
    %c0_38 = arith.constant 0 : index
    %c0_39 = arith.constant 0 : index
    %42 = vector.load %arg6[%c1_37, %c0_38, %c0_39] : memref<5x128x256xbf16, #tpu.memory_space<vmem>>, vector<1x128x256xbf16>
    %43 = vector.shape_cast %42 : vector<1x128x256xbf16> to vector<128x256xbf16>
    %cst_40 = arith.constant dense<0.000000e+00> : vector<10x256xf32>
    %44 = tpu.matmul %41, %43, %cst_40 {dimension_numbers = #tpu.dot_dimension_numbers<[1], [0], [0], [1], [0, 0, 1, 1], [], []>} : vector<10x128xbf16>, vector<128x256xbf16>, vector<10x256xf32> -> vector<10x256xf32>
    %45 = arith.addf %39, %44 : vector<10x256xf32>
    %46 = vector.extract_strided_slice %34 {offsets = [2, 0], sizes = [10, 128], strides = [1, 1]} : vector<14x128xf32> to vector<10x128xf32>
    %47 = arith.truncf %46 : vector<10x128xf32> to vector<10x128xbf16>
    %c2_41 = arith.constant 2 : index
    %c0_42 = arith.constant 0 : index
    %c0_43 = arith.constant 0 : index
    %48 = vector.load %arg6[%c2_41, %c0_42, %c0_43] : memref<5x128x256xbf16, #tpu.memory_space<vmem>>, vector<1x128x256xbf16>
    %49 = vector.shape_cast %48 : vector<1x128x256xbf16> to vector<128x256xbf16>
    %cst_44 = arith.constant dense<0.000000e+00> : vector<10x256xf32>
    %50 = tpu.matmul %47, %49, %cst_44 {dimension_numbers = #tpu.dot_dimension_numbers<[1], [0], [0], [1], [0, 0, 1, 1], [], []>} : vector<10x128xbf16>, vector<128x256xbf16>, vector<10x256xf32> -> vector<10x256xf32>
    %51 = arith.addf %45, %50 : vector<10x256xf32>
    %52 = vector.extract_strided_slice %34 {offsets = [3, 0], sizes = [10, 128], strides = [1, 1]} : vector<14x128xf32> to vector<10x128xf32>
    %53 = arith.truncf %52 : vector<10x128xf32> to vector<10x128xbf16>
    %c3_45 = arith.constant 3 : index
    %c0_46 = arith.constant 0 : index
    %c0_47 = arith.constant 0 : index
    %54 = vector.load %arg6[%c3_45, %c0_46, %c0_47] : memref<5x128x256xbf16, #tpu.memory_space<vmem>>, vector<1x128x256xbf16>
    %55 = vector.shape_cast %54 : vector<1x128x256xbf16> to vector<128x256xbf16>
    %cst_48 = arith.constant dense<0.000000e+00> : vector<10x256xf32>
    %56 = tpu.matmul %53, %55, %cst_48 {dimension_numbers = #tpu.dot_dimension_numbers<[1], [0], [0], [1], [0, 0, 1, 1], [], []>} : vector<10x128xbf16>, vector<128x256xbf16>, vector<10x256xf32> -> vector<10x256xf32>
    %57 = arith.addf %51, %56 : vector<10x256xf32>
    %58 = vector.extract_strided_slice %34 {offsets = [4, 0], sizes = [10, 128], strides = [1, 1]} : vector<14x128xf32> to vector<10x128xf32>
    %59 = arith.truncf %58 : vector<10x128xf32> to vector<10x128xbf16>
    %c4_49 = arith.constant 4 : index
    %c0_50 = arith.constant 0 : index
    %c0_51 = arith.constant 0 : index
    %60 = vector.load %arg6[%c4_49, %c0_50, %c0_51] : memref<5x128x256xbf16, #tpu.memory_space<vmem>>, vector<1x128x256xbf16>
    %61 = vector.shape_cast %60 : vector<1x128x256xbf16> to vector<128x256xbf16>
    %cst_52 = arith.constant dense<0.000000e+00> : vector<10x256xf32>
    %62 = tpu.matmul %59, %61, %cst_52 {dimension_numbers = #tpu.dot_dimension_numbers<[1], [0], [0], [1], [0, 0, 1, 1], [], []>} : vector<10x128xbf16>, vector<128x256xbf16>, vector<10x256xf32> -> vector<10x256xf32>
    %63 = arith.addf %57, %62 : vector<10x256xf32>
    %c0_53 = arith.constant 0 : index
    %c0_54 = arith.constant 0 : index
    %64 = vector.load %arg7[%c0_53, %c0_54] : memref<1x256xf32, #tpu.memory_space<vmem>>, vector<1x256xf32>
    %65 = vector.broadcast %64 : vector<1x256xf32> to vector<10x256xf32>
    %66 = arith.addf %63, %65 : vector<10x256xf32>
    %cst_55 = arith.constant 0.000000e+00 : f32
    %67 = vector.broadcast %cst_55 : f32 to vector<10x256xf32>
    %68 = arith.maximumf %66, %67 : vector<10x256xf32>
    %c0_56 = arith.constant 0 : index
    %c0_57 = arith.constant 0 : index
    %69 = vector.load %arg8[%c0_56, %c0_57] : memref<5x10xbf16, #tpu.memory_space<vmem>>, vector<5x10xbf16>
    %70 = arith.truncf %68 : vector<10x256xf32> to vector<10x256xbf16>
    %cst_58 = arith.constant dense<0.000000e+00> : vector<5x256xf32>
    %71 = tpu.matmul %69, %70, %cst_58 {dimension_numbers = #tpu.dot_dimension_numbers<[1], [0], [0], [1], [0, 0, 1, 1], [], []>} : vector<5x10xbf16>, vector<10x256xbf16>, vector<5x256xf32> -> vector<5x256xf32>
    %72 = arith.truncf %71 : vector<5x256xf32> to vector<5x256xbf16>
    %c0_59 = arith.constant 0 : index
    %c0_60 = arith.constant 0 : index
    %73 = vector.load %arg9[%c0_59, %c0_60] : memref<256x128xbf16, #tpu.memory_space<vmem>>, vector<256x128xbf16>
    %cst_61 = arith.constant dense<0.000000e+00> : vector<5x128xf32>
    %74 = tpu.matmul %72, %73, %cst_61 {dimension_numbers = #tpu.dot_dimension_numbers<[1], [0], [0], [1], [0, 0, 1, 1], [], []>} : vector<5x256xbf16>, vector<256x128xbf16>, vector<5x128xf32> -> vector<5x128xf32>
    %75 = vector.extract_strided_slice %74 {offsets = [0, 0], sizes = [1, 128], strides = [1, 1]} : vector<5x128xf32> to vector<1x128xf32>
    %76 = arith.truncf %75 : vector<1x128xf32> to vector<1x128xbf16>
    %c0_62 = arith.constant 0 : index
    %c0_63 = arith.constant 0 : index
    %c0_64 = arith.constant 0 : index
    %77 = vector.load %arg10[%c0_62, %c0_63, %c0_64] : memref<5x128x128xbf16, #tpu.memory_space<vmem>>, vector<1x128x128xbf16>
    %78 = vector.shape_cast %77 : vector<1x128x128xbf16> to vector<128x128xbf16>
    %cst_65 = arith.constant dense<0.000000e+00> : vector<1x128xf32>
    %79 = tpu.matmul %76, %78, %cst_65 {dimension_numbers = #tpu.dot_dimension_numbers<[1], [0], [0], [1], [0, 0, 1, 1], [], []>} : vector<1x128xbf16>, vector<128x128xbf16>, vector<1x128xf32> -> vector<1x128xf32>
    %80 = vector.extract_strided_slice %74 {offsets = [1, 0], sizes = [1, 128], strides = [1, 1]} : vector<5x128xf32> to vector<1x128xf32>
    %81 = arith.truncf %80 : vector<1x128xf32> to vector<1x128xbf16>
    %c1_66 = arith.constant 1 : index
    %c0_67 = arith.constant 0 : index
    %c0_68 = arith.constant 0 : index
    %82 = vector.load %arg10[%c1_66, %c0_67, %c0_68] : memref<5x128x128xbf16, #tpu.memory_space<vmem>>, vector<1x128x128xbf16>
    %83 = vector.shape_cast %82 : vector<1x128x128xbf16> to vector<128x128xbf16>
    %cst_69 = arith.constant dense<0.000000e+00> : vector<1x128xf32>
    %84 = tpu.matmul %81, %83, %cst_69 {dimension_numbers = #tpu.dot_dimension_numbers<[1], [0], [0], [1], [0, 0, 1, 1], [], []>} : vector<1x128xbf16>, vector<128x128xbf16>, vector<1x128xf32> -> vector<1x128xf32>
    %85 = arith.addf %79, %84 : vector<1x128xf32>
    %86 = vector.extract_strided_slice %74 {offsets = [2, 0], sizes = [1, 128], strides = [1, 1]} : vector<5x128xf32> to vector<1x128xf32>
    %87 = arith.truncf %86 : vector<1x128xf32> to vector<1x128xbf16>
    %c2_70 = arith.constant 2 : index
    %c0_71 = arith.constant 0 : index
    %c0_72 = arith.constant 0 : index
    %88 = vector.load %arg10[%c2_70, %c0_71, %c0_72] : memref<5x128x128xbf16, #tpu.memory_space<vmem>>, vector<1x128x128xbf16>
    %89 = vector.shape_cast %88 : vector<1x128x128xbf16> to vector<128x128xbf16>
    %cst_73 = arith.constant dense<0.000000e+00> : vector<1x128xf32>
    %90 = tpu.matmul %87, %89, %cst_73 {dimension_numbers = #tpu.dot_dimension_numbers<[1], [0], [0], [1], [0, 0, 1, 1], [], []>} : vector<1x128xbf16>, vector<128x128xbf16>, vector<1x128xf32> -> vector<1x128xf32>
    %91 = arith.addf %85, %90 : vector<1x128xf32>
    %92 = vector.extract_strided_slice %74 {offsets = [3, 0], sizes = [1, 128], strides = [1, 1]} : vector<5x128xf32> to vector<1x128xf32>
    %93 = arith.truncf %92 : vector<1x128xf32> to vector<1x128xbf16>
    %c3_74 = arith.constant 3 : index
    %c0_75 = arith.constant 0 : index
    %c0_76 = arith.constant 0 : index
    %94 = vector.load %arg10[%c3_74, %c0_75, %c0_76] : memref<5x128x128xbf16, #tpu.memory_space<vmem>>, vector<1x128x128xbf16>
    %95 = vector.shape_cast %94 : vector<1x128x128xbf16> to vector<128x128xbf16>
    %cst_77 = arith.constant dense<0.000000e+00> : vector<1x128xf32>
    %96 = tpu.matmul %93, %95, %cst_77 {dimension_numbers = #tpu.dot_dimension_numbers<[1], [0], [0], [1], [0, 0, 1, 1], [], []>} : vector<1x128xbf16>, vector<128x128xbf16>, vector<1x128xf32> -> vector<1x128xf32>
    %97 = arith.addf %91, %96 : vector<1x128xf32>
    %98 = vector.extract_strided_slice %74 {offsets = [4, 0], sizes = [1, 128], strides = [1, 1]} : vector<5x128xf32> to vector<1x128xf32>
    %99 = arith.truncf %98 : vector<1x128xf32> to vector<1x128xbf16>
    %c4_78 = arith.constant 4 : index
    %c0_79 = arith.constant 0 : index
    %c0_80 = arith.constant 0 : index
    %100 = vector.load %arg10[%c4_78, %c0_79, %c0_80] : memref<5x128x128xbf16, #tpu.memory_space<vmem>>, vector<1x128x128xbf16>
    %101 = vector.shape_cast %100 : vector<1x128x128xbf16> to vector<128x128xbf16>
    %cst_81 = arith.constant dense<0.000000e+00> : vector<1x128xf32>
    %102 = tpu.matmul %99, %101, %cst_81 {dimension_numbers = #tpu.dot_dimension_numbers<[1], [0], [0], [1], [0, 0, 1, 1], [], []>} : vector<1x128xbf16>, vector<128x128xbf16>, vector<1x128xf32> -> vector<1x128xf32>
    %103 = arith.addf %97, %102 : vector<1x128xf32>
    %c0_82 = arith.constant 0 : index
    %c0_83 = arith.constant 0 : index
    %104 = vector.load %arg11[%c0_82, %c0_83] : memref<1x128xf32, #tpu.memory_space<vmem>>, vector<1x128xf32>
    %105 = arith.addf %103, %104 : vector<1x128xf32>
    %cst_84 = arith.constant 0.000000e+00 : f32
    %106 = vector.broadcast %cst_84 : f32 to vector<1x128xf32>
    %107 = arith.maximumf %105, %106 : vector<1x128xf32>
    %108 = arith.truncf %107 : vector<1x128xf32> to vector<1x128xbf16>
    %c0_85 = arith.constant 0 : index
    %c0_86 = arith.constant 0 : index
    %109 = vector.load %arg12[%c0_85, %c0_86] : memref<128x128xbf16, #tpu.memory_space<vmem>>, vector<128x128xbf16>
    %cst_87 = arith.constant dense<0.000000e+00> : vector<1x128xf32>
    %110 = tpu.matmul %108, %109, %cst_87 {dimension_numbers = #tpu.dot_dimension_numbers<[1], [0], [0], [1], [0, 0, 1, 1], [], []>} : vector<1x128xbf16>, vector<128x128xbf16>, vector<1x128xf32> -> vector<1x128xf32>
    %c0_88 = arith.constant 0 : index
    %c0_89 = arith.constant 0 : index
    %111 = vector.load %arg13[%c0_88, %c0_89] : memref<1x128xf32, #tpu.memory_space<vmem>>, vector<1x128xf32>
    %112 = arith.addf %110, %111 : vector<1x128xf32>
    %c0_90 = arith.constant 0 : index
    %c0_91 = arith.constant 0 : index
    %c0_92 = arith.constant 0 : index
    %113 = vector.load %arg14[%c0_90, %c0_91, %c0_92] : memref<1x1x128xf32, #tpu.memory_space<vmem>>, vector<1x1x128xf32>
    %114 = vector.shape_cast %113 : vector<1x1x128xf32> to vector<1x128xf32>
    %115 = vector.shape_cast %112 : vector<1x128xf32> to vector<1x1x128xf32>
    tpu.vector_store %arg14[%c0_90, %c0_91, %c0_92], %115 {strides = array<i32>} : memref<1x1x128xf32, #tpu.memory_space<vmem>>, vector<1x1x128xf32>,
    return
  }
  func.func @transform_0(%arg0: i32) -> (i32, i32) {
    %c0_i32 = arith.constant 0 : i32
    %c0_i32_0 = arith.constant 0 : i32
    return %arg0, %c0_i32 : i32, i32
  }
  func.func @transform_1(%arg0: i32) -> (i32, i32, i32) {
    %c0_i32 = arith.constant 0 : i32
    %c0_i32_0 = arith.constant 0 : i32
    %c0_i32_1 = arith.constant 0 : i32
    %c0_i32_2 = arith.constant 0 : i32
    return %c0_i32, %c0_i32_0, %c0_i32_1 : i32, i32, i32
  }
  func.func @transform_2(%arg0: i32) -> (i32, i32) {
    %c0_i32 = arith.constant 0 : i32
    %c0_i32_0 = arith.constant 0 : i32
    %c0_i32_1 = arith.constant 0 : i32
    return %c0_i32, %c0_i32_0 : i32, i32
  }
  func.func @transform_3(%arg0: i32) -> (i32, i32) {
    %c0_i32 = arith.constant 0 : i32
    %c0_i32_0 = arith.constant 0 : i32
    %c0_i32_1 = arith.constant 0 : i32
    return %c0_i32, %c0_i32_0 : i32, i32
  }
  func.func @transform_4(%arg0: i32) -> (i32, i32) {
    %c0_i32 = arith.constant 0 : i32
    %c0_i32_0 = arith.constant 0 : i32
    %c0_i32_1 = arith.constant 0 : i32
    return %c0_i32, %c0_i32_0 : i32, i32
  }
  func.func @transform_5(%arg0: i32) -> (i32, i32, i32) {
    %c0_i32 = arith.constant 0 : i32
    %c0_i32_0 = arith.constant 0 : i32
    %c0_i32_1 = arith.constant 0 : i32
    %c0_i32_2 = arith.constant 0 : i32
    return %c0_i32, %c0_i32_0, %c0_i32_1 : i32, i32, i32
  }
  func.func @transform_6(%arg0: i32) -> (i32, i32) {
    %c0_i32 = arith.constant 0 : i32
    %c0_i32_0 = arith.constant 0 : i32
    %c0_i32_1 = arith.constant 0 : i32
    return %c0_i32, %c0_i32_0 : i32, i32
  }
  func.func @transform_7(%arg0: i32) -> (i32, i32) {
    %c0_i32 = arith.constant 0 : i32
    %c0_i32_0 = arith.constant 0 : i32
    %c0_i32_1 = arith.constant 0 : i32
    return %c0_i32, %c0_i32_0 : i32, i32
  }
  func.func @transform_8(%arg0: i32) -> (i32, i32) {
    %c0_i32 = arith.constant 0 : i32
    %c0_i32_0 = arith.constant 0 : i32
    %c0_i32_1 = arith.constant 0 : i32
    return %c0_i32, %c0_i32_0 : i32, i32
  }
  func.func @transform_9(%arg0: i32) -> (i32, i32, i32) {
    %c0_i32 = arith.constant 0 : i32
    %c0_i32_0 = arith.constant 0 : i32
    %c0_i32_1 = arith.constant 0 : i32
    %c0_i32_2 = arith.constant 0 : i32
    return %c0_i32, %c0_i32_0, %c0_i32_1 : i32, i32, i32
  }
  func.func @transform_10(%arg0: i32) -> (i32, i32) {
    %c0_i32 = arith.constant 0 : i32
    %c0_i32_0 = arith.constant 0 : i32
    %c0_i32_1 = arith.constant 0 : i32
    return %c0_i32, %c0_i32_0 : i32, i32
  }
  func.func @transform_11(%arg0: i32) -> (i32, i32) {
    %c0_i32 = arith.constant 0 : i32
    %c0_i32_0 = arith.constant 0 : i32
    %c0_i32_1 = arith.constant 0 : i32
    return %c0_i32, %c0_i32_0 : i32, i32
  }
  func.func @transform_12(%arg0: i32) -> (i32, i32) {
    %c0_i32 = arith.constant 0 : i32
    %c0_i32_0 = arith.constant 0 : i32
    %c0_i32_1 = arith.constant 0 : i32
    return %c0_i32, %c0_i32_0 : i32, i32
  }
  func.func @transform_13(%arg0: i32) -> (i32, i32, i32) {
    %c0_i32 = arith.constant 0 : i32
    %c0_i32_0 = arith.constant 0 : i32
    %c0_i32_1 = arith.constant 0 : i32
    return %arg0, %c0_i32, %c0_i32_0 : i32, i32, i32
  }
}

</mosaic_0001>

<bundles_post_ra>
// kernel: lenet_forward.1
= control target key start
LH: loop header
LB: loop body
LE: loop exit
PB: predicated region body
PF: predicated region fallthrough
CT: control target
= control target key end

     0   :  { %s4587_s0 = inlined_call_operand.vmem [shape: bf16[64,32], index: 0, kind: input, shape index: {}]   ;;  %s4588_s1 = inlined_call_operand.hbm [shape: bf16[5,32,256], index: 1, kind: input, shape index: {}]   ;;  %s4589_s2 = inlined_call_operand.vmem [shape: f32[1,256], index: 2, kind: input, shape index: {}]   ;;  %s4590_s3 = inlined_call_operand.vmem [shape: bf16[14,28], index: 3, kind: input, shape index: {}]   ;;  %s4591_s4 = inlined_call_operand.hbm [shape: bf16[256,128], index: 4, kind: input, shape index: {}]   ;;  %s4592_s5 = inlined_call_operand.hbm [shape: bf16[5,128,256], index: 5, kind: input, shape index: {}]   ;;  %s4593_s6 = inlined_call_operand.vmem [shape: f32[1,256], index: 6, kind: input, shape index: {}]   ;;  %s4594_s7 = inlined_call_operand.vmem [shape: bf16[5,10], index: 7, kind: input, shape index: {}]   ;;  %s4595_s8 = inlined_call_operand.hbm [shape: bf16[256,128], index: 8, kind: input, shape index: {}]   ;;  %s4596_s9 = inlined_call_operand.hbm [shape: bf16[5,128,128], index: 9, kind: input, shape index: {}]   ;;  %s4597_s10 = inlined_call_operand.vmem [shape: f32[1,128], index: 10, kind: input, shape index: {}]   ;;  %s4598_s11 = inlined_call_operand.vmem [shape: bf16[128,128], index: 11, kind: input, shape index: {}]   ;;  %s4599_s12 = inlined_call_operand.vmem [shape: f32[1,128], index: 12, kind: input, shape index: {}]   ;;  %s4600_s13 = inlined_call_operand.hbm [shape: f32[2,1,128], index: 13, kind: output, shape index: {}]  }
   0x1   :  { %4615 = sst [smem:[#allocation23_spill]] %s4591_s4 }
   0x2   :  { %4616 = sst [smem:[#allocation24_spill]] %s4595_s8 }
   0x3   :  { %4617 = sst [smem:[#allocation25_spill]] %s4599_s12 }
   0x4   :  { %4618 = sst [smem:[#allocation26_spill]] %s4600_s13 }
   0x5   :  { %18 = vsyncpa [#allocation3], 0 }
   0x6   :  { %19 = vsyncpa [#allocation6], 0 }
   0x7   :  { %20 = vsyncpa [#allocation9], 0 }
   0x8   :  { %21 = vsyncpa [#allocation4], 0 }
   0x9   :  { %23 = vsyncpa [#allocation4 + $0x1], 0  ;;  %s4153_s25 = smov 0   ;;  %s4155_s26 = smov 0  }
   0xa   :  { %s4157_s27 = smov 0   ;;  %s4159_s28 = smov 0  }
   0xb LB: > { %4619 = sst [smem:[#allocation16_spill]] %s4056_s25  ;;  %s4174_s29 = sadd.s32 4294967295, %s4068_s28   ;;  %s4068_s28 = sphi %s4159_s28, %s4650_s28   ;;  %s4064_s27 = sphi %s4157_s27, %s4652_s27   ;;  %s4060_s26 = sphi %s4155_s26, %s4654_s26   ;;  %s4056_s25 = sphi %s4153_s25, %s4653_s25  }
   0xc   : > { %4620 = sst [smem:[#allocation17_spill]] %s4064_s27  ;;  %s3034_s30 = sadd.s32 4294967294, %s4068_s28  }
   0xd   : > { %4621 = sst [smem:[#allocation18_spill]] %s4068_s28  ;;  %s4178_s14 = sadd.s32 1, %s4068_s28  }
   0xe   : > { %4622 = sst [smem:[#allocation19_spill]] %s4178_s14  ;;  %s314_s15 = sadd.s32 1, %s4064_s27 }
   0xf   : > { %s311_s16 = ssub.s32 %s4068_s28, %s4178_s14  ;;  %p324_p0 = scmp.ne.s32.totalorder %s4064_s27, %s4060_s26 }
  0x10   : > { %p312_p1 = scmp.eq.s32.totalorder %s311_s16, 0  ;;  %p325_p2 = scmp.eq.s32.totalorder %s4174_s29, 1 }
  0x11   : > { %p330_p3 = scmp.ne.s32.totalorder %s4060_s26, %s4056_s25  ;;  %p331_p4 = scmp.eq.s32.totalorder %s3034_s30, 1 }
  0x12   : > { %s4189_s17 = scalar_select %p312_p1, %s4064_s27, %s314_s15  }
  0x13   : > { %p4191_p5 = por %p325_p2, %p324_p0  ;;  %p4195_p6 = por %p331_p4, %p330_p3 }
  0x14   : > { %4623 = sst [smem:[#allocation20_spill]] %s4189_s17  ;;  %p3035_p7 = scmp.ge.s32.totalorder %s4068_s28, 1 }
  0x15   : > { %s4624_s18 = scalar_select %p4191_p5, 1, 0 }
  0x16   : > { %s4626_s19 = scalar_select %p4195_p6, 1, 0 }
  0x17   : > { %4625 = sst [smem:[#allocation21_spill]] %s4624_s18  ;;  %p338_p8 = scmp.lt.s32.totalorder %s4068_s28, 3 }
  0x18   : > { %4627 = sst [smem:[#allocation22_spill]] %s4626_s19  ;;  %p4606_p9 = scmp.eq.s32.totalorder %s4174_s29, 0 }
  0x19   : > { %p4202_p10 = pnand %p3035_p7, %p338_p8  ;;  %s4070_s21 = smov [#allocation5]  }
  0x1a   : > { %s369_s22 = sshll.u32 %s4070_s21, 4  ;;  %s4071_s24 = smov [#allocation8]   ;;  %s4208_s22 = int_to_ptr.vmem [resolvable:$true] %s369_s22 }
  0x1b   : > { %s4628_s20 = scalar_select %p4202_p10, 1, 0 }
  0x1c   : > { %p3542_p11 = pneg %p4202_p10  ;;  %s401_s30 = sshll.u32 %s4071_s24, 4  ;;  %s4216_s30 = int_to_ptr.vmem [resolvable:$true] %s401_s30 }
  0x1d   : > { %s4072_s15 = smov [#allocation2]   ;;  %s4630_s4 = sld [smem:[#allocation23_spill]] }
  0x1e   : > { %p4212_p12 = pnand %p4606_p9, %p3542_p11  ;;  %s4218_s16 = sshll.u32 %s4072_s15, 4  ;;  %s351_s16 = int_to_ptr.vmem [resolvable:$true] %s4218_s16 }
  0x20   : > { %p4228_p0 = pneg %p4212_p12 }
  0x23   : > { %s3854_s21 = scalar_lea.hbm %s4630_s4, 2048 }
  0x24   : > { %p3855_p13 = scmp.ne.s32.totalorder %s4630_s4, %s3854_s21  ;;  %p3861_p3 = scmp.lt.u32.totalorder %s3854_s21, %s4630_s4 }
  0x26   : > { %p3857_p1 = pnand %p4228_p0, %p3855_p13 }
  0x28   : > { %p3858_p2 = pneg %p3857_p1 }
  0x2a   : > { %p3863_p4 = pnand %p3861_p3, %p3858_p2 }
  0x2c   : > { %3866 = shalt.err (!%p3863_p4)
}
  0x2d   : > { %s3867_s27 = scalar_lea.vmem %s4208_s22, 2048  ;;  %p3875_p9 = scmp.lt.s32.totalorder %s4208_s22, %s4208_s22 }
  0x2e   : > { %p3868_p7 = scmp.ne.s32.totalorder %s4208_s22, %s3867_s27  ;;  %p3876_p6 = scmp.lt.s32.totalorder %s3867_s27, %s3867_s27 }
  0x30   : > { %p3870_p8 = pnand %p3868_p7, %p4228_p0  ;;  %p3877_p13 = por %p3876_p6, %p3875_p9 }
  0x32   : > { %p3871_p11 = pneg %p3870_p8 }
  0x34   : > { %p3878_p1 = pnand %p3877_p13, %p3871_p11 }
  0x36   : > { %3881 = shalt.err (!%p3878_p1)
}
  0x37   : > { %s4613_s14 = smov 64   ;;  %s4614_s17 = smov 4  }
  0x38   : > { %3548 = dma.hbm_to_vmem [thread:$0]  (!%p4212_p12), %s4630_s4, 2048, %s4208_s22, [#allocation6], %s4613_s14, %s4613_s14, %s4614_s17  }
  0x39   : > { %s4632_s8 = sld [smem:[#allocation24_spill]] }
  0x3f   : > { %s3882_s27 = scalar_lea.hbm %s4632_s8, 2048 }
  0x40   : > { %p3883_p6 = scmp.ne.s32.totalorder %s4632_s8, %s3882_s27  ;;  %p3889_p3 = scmp.lt.u32.totalorder %s3882_s27, %s4632_s8 }
  0x42   : > { %p3885_p9 = pnand %p3883_p6, %p4228_p0 }
  0x44   : > { %p3886_p2 = pneg %p3885_p9 }
  0x46   : > { %p3891_p4 = pnand %p3889_p3, %p3886_p2 }
  0x48   : > { %3894 = shalt.err (!%p3891_p4)
}
  0x49   : > { %s3895_s22 = scalar_lea.vmem %s4216_s30, 2048  ;;  %p3903_p13 = scmp.lt.s32.totalorder %s4216_s30, %s4216_s30 }
  0x4a   : > { %p3896_p7 = scmp.ne.s32.totalorder %s4216_s30, %s3895_s22  ;;  %p3904_p1 = scmp.lt.s32.totalorder %s3895_s22, %s3895_s22 }
  0x4c   : > { %p3898_p8 = pnand %p3896_p7, %p4228_p0  ;;  %p3905_p6 = por %p3904_p1, %p3903_p13 }
  0x4e   : > { %p3899_p11 = pneg %p3898_p8 }
  0x50   : > { %p3906_p9 = pnand %p3905_p6, %p3899_p11 }
  0x52   : > { %3909 = shalt.err (!%p3906_p9)
}
  0x53   : > { %3554 = dma.hbm_to_vmem [thread:$0]  (!%p4212_p12), %s4632_s8, 2048, %s4216_s30, [#allocation9], %s4613_s14, %s4613_s14, %s4614_s17  }
  0x54   : > { %s3910_s19 = scalar_lea.hbm %s4588_s1, 2560 }
  0x55   : > { %p3911_p2 = scmp.ne.s32.totalorder %s4588_s1, %s3910_s19  ;;  %p3917_p7 = scmp.lt.u32.totalorder %s3910_s19, %s4588_s1 }
  0x57   : > { %p3913_p3 = pnand %p3911_p2, %p4228_p0 }
  0x59   : > { %p3914_p4 = pneg %p3913_p3 }
  0x5b   : > { %p3919_p8 = pnand %p3917_p7, %p3914_p4 }
  0x5d   : > { %3922 = shalt.err (!%p3919_p8)
}
  0x5e   : > { %s3923_s22 = scalar_lea.vmem %s351_s16, 2560  ;;  %p3931_p6 = scmp.lt.s32.totalorder %s351_s16, %s351_s16 }
  0x5f   : > { %p3924_p11 = scmp.ne.s32.totalorder %s351_s16, %s3923_s22  ;;  %p3932_p9 = scmp.lt.s32.totalorder %s3923_s22, %s3923_s22 }
  0x61   : > { %p3926_p13 = pnand %p3924_p11, %p4228_p0  ;;  %p3933_p5 = por %p3932_p9, %p3931_p6 }
  0x63   : > { %p3927_p1 = pneg %p3926_p13 }
  0x65   : > { %p3934_p10 = pnand %p3933_p5, %p3927_p1 }
  0x67   : > { %3937 = shalt.err (!%p3934_p10)
}
  0x68   : > { %s4075_s30 = smov 128   ;;  %s4076_s12 = smov 8  }
  0x69   : > { %3545 = dma.hbm_to_vmem [thread:$0]  (!%p4212_p12), %s4588_s1, 2560, %s351_s16, [#allocation3], %s4075_s30, %s4075_s30, %s4076_s12  }
  0x6a   : > { %s4077_s18 = smov [#allocation7]   ;;  %s4078_s21 = smov [#allocation10]  }
  0x6b   : > { %s382_s19 = sshll.u32 %s4077_s18, 4  ;;  %s414_s24 = sshll.u32 %s4078_s21, 4  ;;  %s383_s19 = int_to_ptr.vmem [resolvable:$true] %s382_s19  ;;  %s415_s24 = int_to_ptr.vmem [resolvable:$true] %s414_s24 }
  0x6c   : > { %s3938_s22 = scalar_lea.hbm %s4592_s5, 10240 }
  0x6d   : > { %p3939_p5 = scmp.ne.s32.totalorder %s4592_s5, %s3938_s22  ;;  %p3945_p3 = scmp.lt.u32.totalorder %s3938_s22, %s4592_s5 }
  0x6f   : > { %p3941_p10 = pnand %p3939_p5, %p4228_p0 }
  0x71   : > { %p3942_p2 = pneg %p3941_p10 }
  0x73   : > { %p3947_p4 = pnand %p3945_p3, %p3942_p2 }
  0x75   : > { %3950 = shalt.err (!%p3947_p4)
}
  0x76   : > { %s3951_s16 = scalar_lea.vmem %s383_s19, 10240  ;;  %p3959_p13 = scmp.lt.s32.totalorder %s383_s19, %s383_s19 }
  0x77   : > { %p3952_p7 = scmp.ne.s32.totalorder %s383_s19, %s3951_s16  ;;  %p3960_p1 = scmp.lt.s32.totalorder %s3951_s16, %s3951_s16 }
  0x79   : > { %p3954_p8 = pnand %p3952_p7, %p4228_p0  ;;  %p3961_p6 = por %p3960_p1, %p3959_p13 }
  0x7b   : > { %p3955_p11 = pneg %p3954_p8 }
  0x7d   : > { %p3962_p9 = pnand %p3961_p6, %p3955_p11 }
  0x7f   : > { %3965 = shalt.err (!%p3962_p9)
}
  0x80   : > { %3551 = dma.hbm_to_vmem [thread:$0]  (!%p4212_p12), %s4592_s5, 10240, %s383_s19, [#allocation6], %s4075_s30, %s4075_s30, %s4076_s12  }
  0x81   : > { %s3966_s13 = scalar_lea.hbm %s4596_s9, 5120 }
  0x82   : > { %p3967_p5 = scmp.ne.s32.totalorder %s4596_s9, %s3966_s13  ;;  %p3973_p3 = scmp.lt.u32.totalorder %s3966_s13, %s4596_s9 }
  0x84   : > { %p3969_p10 = pnand %p3967_p5, %p4228_p0 }
  0x86   : > { %p3970_p2 = pneg %p3969_p10 }
  0x88   : > { %p3975_p4 = pnand %p3973_p3, %p3970_p2 }
  0x8a   : > { %3978 = shalt.err (!%p3975_p4)
}
  0x8b   : > { %s3979_s27 = scalar_lea.vmem %s415_s24, 5120  ;;  %p3987_p13 = scmp.lt.s32.totalorder %s415_s24, %s415_s24 }
  0x8c   : > { %p3980_p7 = scmp.ne.s32.totalorder %s415_s24, %s3979_s27  ;;  %p3988_p1 = scmp.lt.s32.totalorder %s3979_s27, %s3979_s27 }
  0x8e   : > { %p3982_p8 = pnand %p3980_p7, %p4228_p0  ;;  %p3989_p6 = por %p3988_p1, %p3987_p13 }
  0x90   : > { %p3983_p11 = pneg %p3982_p8 }
  0x92   : > { %p3990_p9 = pnand %p3989_p6, %p3983_p11 }
  0x94   : > { %3993 = shalt.err (!%p3990_p9)
}
  0x95   : > { %s4633_s30 = smov 4   ;;  %s4634_s12 = smov 64  }
  0x96   : > { %3557 = dma.hbm_to_vmem [thread:$0]  (!%p4212_p12), %s4596_s9, 5120, %s415_s24, [#allocation9], %s4634_s12, %s4634_s12, %s4633_s30  }
  0x97   : > { %p4635_p5 = scmp.ne.s32.totalorder %s4628_s20, 0 }
  0x98   : > { %p4636_p0 = scmp.eq.s32.totalorder (!%p4635_p5), %s4174_s29, 0 }
  0x99   : > { %448 = sbr.rel (%p4635_p5) target bundleno = 2255 (0x8cf), region = 72 }
  0xa0   : > { %4039 = dma.done.wait (%p4636_p0), [#allocation3], 2560   ;;  %p4637_p10 = pmov %p4636_p0 }
  0xa1   : > { %p4638_p2 = pmov %p4636_p0 }
  0xa2   : > { %4041 = vsyncadd (%p4637_p10), [#allocation3], 4294964736 }
  0xa3   : > { %4043 = dma.done.wait (%p4638_p2), [#allocation6], 12288   ;;  %p4639_p3 = pmov %p4636_p0 }
  0xa4   : > { %p4640_p4 = pmov %p4636_p0 }
  0xa5   : > { %4045 = vsyncadd (%p4639_p3), [#allocation6], 4294955008 }
  0xa6   : > { %4047 = dma.done.wait (%p4640_p4), [#allocation9], 7168   ;;  %p4641_p12 = pmov %p4636_p0 }
  0xa7   : > { %s3048_s25 = sshll.u32 %s4174_s29, 2  ;;  %v4079_v0 = vmov 0   ;;  %v3617_v1 = vld [vmem:[#allocation2 + $0x24] ss:$8 sps:$4 sm:$0xff]   ;;  %v3619_v2 = vld [vmem:[#allocation2 + $0x20] ss:$8 sps:$4 sm:$0xff]  }
  0xa8   : > { %4049 = vsyncadd (%p4641_p12), [#allocation9], 4294960128  ;;  %613 = vmatprep.mubr.bf16.mxu0 %v4079_v0  ;;  %p508_p7 = scmp.lt.s32.totalorder %s3048_s25, 7  ;;  %581 = vmatprep.subr.bf16.mxu0 %v3617_v1  ;;  %v3620_v3 = vld [vmem:[#allocation2 + $0x34] ss:$8 sps:$4 sm:$0xff]   ;;  %vm574_vm1 = vcmask 261120  }
  0xa9   : > { %v3622_v4 = vld [vmem:[#allocation2 + $0x30] ss:$8 sps:$4 sm:$0xff]   ;;  %582 = vmatpush1.bf16.msra.mxu0 %v3619_v2  ;;  %v3628_v11 = vld [vmem:[#allocation2 + $0x4] ss:$8 sps:$4 sm:$0xff]   ;;  %vm538_vm0 = vsmask.f32 7424 }
  0xaa   : > { %s4656_s25 = smov (!%p508_p7, %s3048_s25), 7  ;;  %583 = vmatprep.subr.bf16.mxu0 %v3620_v3  ;;  %v3626_v18 = vld [vmem:[#allocation2] ss:$8 sps:$4 sm:$0xff]   ;;  %v3631_v19 = vld [vmem:[#allocation2 + $0x14] ss:$8 sps:$4 sm:$0xff]   ;;  %vm724_vm2 = vcmask 1046528  }
  0xab   : > { %s3049_s20 = sshll.u32 %s4656_s25, 2  ;;  %v3629_v22 = vld [vmem:[#allocation2 + $0x10] ss:$8 sps:$4 sm:$0xff]   ;;  %v3634_v23 = vld [vmem:[#allocation2 + $0x44] ss:$8 sps:$4 sm:$0xff]   ;;  %vm938_vm4 = vcmask 1045504  }
  0xac   : > { %s4355_s16 = scalar_lea.vmem %s4587_s0, %s3049_s20  ;;  %v3632_v27 = vld [vmem:[#allocation2 + $0x40] ss:$8 sps:$4 sm:$0xff]   ;;  %v3638_v28 = vld [vmem:[#allocation2 + $0x54] ss:$8 sps:$4 sm:$0xff]   ;;  %v3636_v30 = vld [vmem:[#allocation2 + $0x50] ss:$8 sps:$4 sm:$0xff]  }
  0xad   : > { %v514_v5 = vld [vmem:[%s4355_s16] sm:$0xf]  ;;  %v4359_v6 = vld [vmem:[%s4355_s16 + $0x4] sm:$0xf]  ;;  %v516_v7 = vld [vmem:[%s4355_s16 + $0x8] sm:$0xf]  ;;  %584 = vmatpush1.bf16.msra.mxu0 %v3622_v4 }
  0xae   : > { %v522_v8 = vld [vmem:[%s4355_s16 + $0xc] sm:$0x7]  ;;  %v3050_v9 = vcombine.low %v514_v5, %v4359_v6  ;;  %662 = vmatprep.subr.bf16.mxu0 %v3628_v11  ;;  %v929_v25 = vld [vmem:[%s4355_s16] sm:$0xc]  ;;  %v3645_v40 = vld [vmem:[#allocation2 + $0x74] ss:$8 sps:$4 sm:$0xff]   ;;  %v1031_v11 = vlaneseq }
  0xaf   : > { %v4364_v10 = vcombine.low %v516_v7, %v522_v8  ;;  %v3079_v26 = vcombine.low %v929_v25, %v4359_v6  ;;  %v517_v29 = vld [vmem:[%s4355_s16 + $0xc] sm:$0x3]  ;;  %v715_v31 = vld [vmem:[%s4355_s16] sm:$0xe]  ;;  %v3643_v42 = vld [vmem:[#allocation2 + $0x70] ss:$8 sps:$4 sm:$0xff]  }
  0xb0   : > { %v540_v12 = vshrl.u32 %v3050_v9, 16  ;;  %v542_v13 = vshll.u32 %v3050_v9, 16  ;;  %v3642_v32 = vld [vmem:[#allocation2 + $0x64] ss:$8 sps:$4 sm:$0xff]   ;;  %v3058_v33 = vcombine.low %v516_v7, %v517_v29  ;;  %v3065_v34 = vcombine.low %v715_v31, %v4359_v6  ;;  %v3640_v38 = vld [vmem:[#allocation2 + $0x60] ss:$8 sps:$4 sm:$0xff]  }
  0xb1   : > { %v547_v14 = vshll.u32 %v4364_v10, 16  ;;  %v551_v21 = vshrl.u32 %v4364_v10, 16  ;;  %v815_v35 = vld [vmem:[%s4355_s16 + $0xc] sm:$0xf]  ;;  %v726_v37 = vrot.slane %v4364_v10, 1  ;;  %v939_v54 = vrot.slane %v3079_v26, 2 }
  0xb2   : > { %v544_v15 = vrot.slane %v542_v13, 1  ;;  %v725_v36 = vrot.slane %v3065_v34, 1  ;;  %v3072_v39 = vcombine.low %v516_v7, %v815_v35  ;;  %v3648_v44 = vld [vmem:[#allocation2 + $0x84] ss:$8 sps:$4 sm:$0xff]   ;;  %v826_v45 = vshrl.u32 %v3065_v34, 16  ;;  %v3658_v2 = vld [vmem:[#allocation5 + $0x50] sm:$0xff]  }
  0xb3   : > { %v549_v16 = vrot.slane %v547_v14, 1  ;;  %v829_v46 = vshll.u32 %v3065_v34, 16  ;;  %vm824_vm3 = vsmask.f32 6400  ;;  %v3646_v56 = vld [vmem:[#allocation2 + $0x80] ss:$8 sps:$4 sm:$0xff]  }
  0xb4   : > { %v545_v17 = vor.u32 %v544_v15, %v540_v12  ;;  %v727_v41 = vsel %vm724_vm2, %v725_v36, %v726_v37  ;;  %v834_v43 = vshrl.u32 %v3072_v39, 16  ;;  %v837_v47 = vshll.u32 %v3072_v39, 16  ;;  %v3651_v57 = vld [vmem:[#allocation2 + $0x94] ss:$8 sps:$4 sm:$0xff]   ;;  %v3649_v59 = vld [vmem:[#allocation2 + $0x90] ss:$8 sps:$4 sm:$0xff]  }
  0xb5   : > { %v553_v24 = vor.u32 %v551_v21, %v549_v16  ;;  %v828_v49 = vrot.slane %v826_v45, 1  ;;  %v831_v50 = vrot.slane %v829_v46, 2  ;;  %v940_v55 = vrot.slane %v3072_v39, 2  ;;  %v3654_v61 = vld [vmem:[#allocation5 + $0x40] sm:$0xff]   ;;  %v3656_v63 = vld [vmem:[#allocation5 + $0x48] sm:$0xff]   ;;  %v3659_v3 = vld [vmem:[#allocation5 + $0x10] sm:$0xff]  }
  0xb6   : > { %v550_v20 = vsel %vm538_vm0, %v545_v17, %v549_v16  ;;  %v836_v48 = vrot.slane %v834_v43, 1  ;;  %v839_v51 = vrot.slane %v837_v47, 2  ;;  %v3655_v62 = vld [vmem:[#allocation5] sm:$0xff]   ;;  %3254 = vmatprep.subr.bf16.mxu1 %v3654_v61  ;;  %v3657_v1 = vld [vmem:[#allocation5 + $0x8] sm:$0xff]   ;;  %v3660_v4 = vld [vmem:[#allocation5 + $0x58] sm:$0xff]   ;;  %v4396_v12 = vshrl.u32 %v1031_v11, 7 }
  0xb7   : > { %3056 = vmatmul.mubr.msk.bf16.vlgmr.msra.gmra.mrb[0].mxu0 %vm574_vm1, %v550_v20  ;;  %v832_v52 = vor.u32 %v831_v50, %v828_v49  ;;  %v941_v60 = vsel %vm938_vm4, %v939_v54, %v940_v55  ;;  %3255 = vmatpush3.bf16.msra.mxu1 %v3655_v62  ;;  %v3661_v5 = vld [vmem:[#allocation5 + $0x18] sm:$0xff]   ;;  %v3662_v6 = vld [vmem:[#allocation5 + $0x60] sm:$0xff]   ;;  %v3664_v8 = vld [vmem:[#allocation5 + $0x68] sm:$0xff]   ;;  %vm1068_vm5 = vcmask 228352   ;;  %vm2049_vm6 = vcmask 1044480   ;;  %s505_s21 = sand.u32 1, %s4060_s26  }
  0xb8   : > { %663 = vmatpush1.bf16.msra.mxu0 %v3626_v18  ;;  %623 = vmatprep.mubr.bf16.mxu0 %v4079_v0  ;;  %v840_v53 = vor.u32 %v839_v51, %v836_v48  ;;  %v3663_v7 = vld [vmem:[#allocation5 + $0x20] sm:$0xff]   ;;  %v3666_v10 = vld [vmem:[#allocation5 + $0x70] sm:$0xff]   ;;  %v1033_v13 = vsub.s32 0, %v4396_v12  ;;  %v1037_v15 = vsub.s32 1, %v4396_v12  ;;  %v3668_v49 = vld [vmem:[#allocation5 + $0x78] sm:$0xff]   ;;  %vm2045_vm7 = vcmask 80896  }
  0xb9   : > { %664 = vmatprep.subr.bf16.mxu0 %v3631_v19  ;;  %3256 = vmatprep.subr.bf16.mxu1 %v3656_v63  ;;  %v1029_v14 = vld [vmem:[%s4589_s2] sm:$0x3]  ;;  %v3667_v48 = vld [vmem:[#allocation5 + $0x30] sm:$0xff]   ;;  %v3669_v50 = vld [vmem:[#allocation5 + $0x38] sm:$0xff]   ;;  %vm4081_vm8 = vmmov 0   ;;  %s4642_s30 = sld [smem:[#allocation25_spill]] }
  0xba   : > { %v841_v58 = vsel %vm824_vm3, %v832_v52, %v840_v53  ;;  %v1034_v16 = vrot.slane %v1029_v14, %v1033_v13  ;;  %v1038_v17 = vrot.slane %v1029_v14, %v1037_v15  ;;  %v3653_v47 = vld [vmem:[%s4590_s3] sm:$0x7f]   ;;  %v3681_v63 = vld [vmem:[#allocation7 + $0xb4] ss:$8 sps:$4 sm:$0xff]   ;;  %s4643_s12 = sld [smem:[#allocation21_spill]]  ;;  %s3251_s19 = sshll.u32 %s4174_s29, 4 }
  0xbb   : > { %3257 = vmatpush3.bf16.msra.mxu1 %v3657_v1  ;;  %v3672_v51 = vld [vmem:[#allocation7 + $0x84] ss:$8 sps:$4 sm:$0xff]   ;;  %v3676_v62 = vld [vmem:[#allocation7 + $0xa0] ss:$8 sps:$4 sm:$0xff]   ;;  %v3679_v1 = vld [vmem:[#allocation7 + $0xb0] ss:$8 sps:$4 sm:$0xff]  }
  0xbc   : > { %665 = vmatpush1.bf16.msra.mxu0 %v3629_v22  ;;  %3258 = vmatprep.subr.bf16.mxu1 %v3658_v2  ;;  %v3678_v61 = vld [vmem:[#allocation7 + $0xa4] ss:$8 sps:$4 sm:$0xff]   ;;  %v2042_v12 = vld [vmem:[%s4594_s7] sm:$0x7]  ;;  %s506_s22 = scalar_lea.vmem [#allocation11], %s505_s21  ;;  %s4644_s24 = sld [smem:[#allocation26_spill]] }
  0xbd   : > { %754 = vmatprep.subr.bf16.mxu0 %v3634_v23  ;;  %v3684_v2 = vld [vmem:[#allocation7 + $0xc4] ss:$8 sps:$4 sm:$0xff]   ;;  %s2929_s25 = sshll.u32 %s506_s22, 4  ;;  %s2917_s14 = scalar_lea.sflag [#allocation4], %s505_s21  ;;  %s4547_s25 = int_to_ptr.vmem [resolvable:$true] %s2929_s25 }
  0xbe   : > { %s3994_s29 = scalar_lea.vmem %s4547_s25, 16  ;;  %s4082_s17 = smov [#allocation11]  }
  0xbf   : > { %3057 = vmatmul.mubr.msk.bf16.gmra.mrb[4].mxu0 %vm574_vm1, %v553_v24  ;;  %3259 = vmatpush3.bf16.msra.mxu1 %v3659_v3  ;;  %v3682_v3 = vld [vmem:[#allocation7 + $0xc0] ss:$8 sps:$4 sm:$0xff]   ;;  %p3995_p8 = scmp.ne.s32.totalorder %s4547_s25, %s3994_s29  ;;  %s3998_s4 = sshll.u32 %s4082_s17, 4  ;;  %s3999_s4 = int_to_ptr.vmem [resolvable:$false] %s3998_s4 }
  0xc0   : > { %694 = vmatprep.mubr.bf16.mxu0 %v4079_v0  ;;  %3260 = vmatprep.subr.bf16.mxu1 %v3660_v4  ;;  %v3687_v4 = vld [vmem:[#allocation7 + $0xd4] ss:$8 sps:$4 sm:$0xff]   ;;  %p4645_p11 = scmp.ne.s32.totalorder %s4643_s12, 0  ;;  %s4000_s8 = scalar_lea.vmem %s3999_s4, 32 }
  0xc1   : > { %p4001_p6 = scmp.lt.s32.totalorder %s4547_s25, %s3999_s4  ;;  %p4002_p9 = scmp.lt.s32.totalorder %s4000_s8, %s3994_s29 }
  0xc2   : > { %s4545_s16 = scalar_lea.hbm %s4644_s24, %s3251_s19  ;;  %p3996_p13 = pnand %p3995_p8, %p4645_p11 }
  0xc3   : > { %3261 = vmatpush3.bf16.msra.mxu1 %v3661_v5  ;;  %v3685_v5 = vld [vmem:[#allocation7 + $0xd0] ss:$8 sps:$4 sm:$0xff]   ;;  %p4003_p5 = por %p4002_p9, %p4001_p6 }
  0xc4   : > { %3262 = vmatprep.subr.bf16.mxu1 %v3662_v6  ;;  %v3690_v6 = vld [vmem:[#allocation7 + $0xe4] ss:$8 sps:$4 sm:$0xff]   ;;  %p3997_p1 = pneg %p3996_p13 }
  0xc6   : > { %p4004_p0 = pnand %p4003_p5, %p3997_p1 }
  0xc7   : > { %3063 = vmatmul.mubr.msk.bf16.vlgmr.msra.gmra.mrb[0].mxu0 %vm574_vm1, %v3050_v9  ;;  %3263 = vmatpush3.bf16.msra.mxu1 %v3663_v7  ;;  %v3665_v9 = vld [vmem:[#allocation5 + $0x28] sm:$0xff]  }
  0xc8   : > { %755 = vmatpush1.bf16.msra.mxu0 %v3632_v27  ;;  %704 = vmatprep.mubr.bf16.mxu0 %v4079_v0  ;;  %v3688_v7 = vld [vmem:[#allocation7 + $0xe0] ss:$8 sps:$4 sm:$0xff]  }
  0xc9   : > { %756 = vmatprep.subr.bf16.mxu0 %v3638_v28  ;;  %3264 = vmatprep.subr.bf16.mxu1 %v3664_v8  ;;  %v3691_v8 = vld [vmem:[#allocation7 + $0xf0] ss:$8 sps:$4 sm:$0xff]  }
  0xcb   : > { %3265 = vmatpush3.bf16.msra.mxu1 %v3665_v9  ;;  %v3693_v9 = vld [vmem:[#allocation7 + $0xf4] ss:$8 sps:$4 sm:$0xff]  }
  0xcc   : > { %757 = vmatpush1.bf16.msra.mxu0 %v3636_v30  ;;  %3266 = vmatprep.subr.bf16.mxu1 %v3666_v10  ;;  %v3696_v10 = vld [vmem:[#allocation7 + $0x4] ss:$8 sps:$4 sm:$0xff]  }
  0xcd   : > { %868 = vmatprep.subr.bf16.mxu0 %v3642_v32 }
  0xcf   : > { %3064 = vmatmul.mubr.msk.bf16.gmra.mrb[4].mxu0 %vm574_vm1, %v3058_v33  ;;  %3267 = vmatpush3.bf16.msra.mxu1 %v3667_v48  ;;  %v3724_v48 = vld [vmem:[#allocation7 + $0x120] ss:$8 sps:$4 sm:$0xff]  }
  0xd0   : > { %786 = vmatprep.mubr.bf16.mxu0 %v4079_v0  ;;  %3268 = vmatprep.subr.bf16.mxu1 %v3668_v49  ;;  %v3729_v49 = vld [vmem:[#allocation7 + $0x134] ss:$8 sps:$4 sm:$0xff]  }
  0xd3   : > { %3269 = vmatpush3.bf16.msra.mxu1 %v3669_v50  ;;  %v3727_v50 = vld [vmem:[#allocation7 + $0x130] ss:$8 sps:$4 sm:$0xff]  }
  0xd4   : > { %1415 = vmatprep.subr.bf16.mxu1 %v3672_v51  ;;  %v3732_v51 = vld [vmem:[#allocation7 + $0x144] ss:$8 sps:$4 sm:$0xff]  }
  0xd7   : > { %3070 = vmatmul.mubr.msk.bf16.vlgmr.msra.gmra.mrb[0].mxu0 %vm574_vm1, %v727_v41 }
  0xd8   : > { %869 = vmatpush1.bf16.msra.mxu0 %v3640_v38  ;;  %796 = vmatprep.mubr.bf16.mxu0 %v4079_v0 }
  0xd9   : > { %870 = vmatprep.subr.bf16.mxu0 %v3645_v40 }
  0xdc   : > { %871 = vmatpush1.bf16.msra.mxu0 %v3643_v42 }
  0xdd   : > { %968 = vmatprep.subr.bf16.mxu0 %v3648_v44 }
  0xdf   : > { %3071 = vmatmul.mubr.msk.bf16.gmra.mrb[4].mxu0 %vm574_vm1, %v726_v37 }
  0xe0   : > { %900 = vmatprep.mubr.bf16.mxu0 %v4079_v0 }
  0xe7   : > { %3077 = vmatmul.mubr.msk.bf16.vlgmr.msra.gmra.mrb[0].mxu0 %vm574_vm1, %v841_v58  ;;  %v3670_v58 = vld [vmem:[#allocation7 + $0x80] ss:$8 sps:$4 sm:$0xff]  }
  0xe8   : > { %969 = vmatpush1.bf16.msra.mxu0 %v3646_v56  ;;  %910 = vmatprep.mubr.bf16.mxu0 %v4079_v0 }
  0xe9   : > { %970 = vmatprep.subr.bf16.mxu0 %v3651_v57 }
  0xec   : > { %971 = vmatpush1.bf16.msra.mxu0 %v3649_v59  ;;  %v3675_v59 = vld [vmem:[#allocation7 + $0x94] ss:$8 sps:$4 sm:$0xff]  }
  0xef   : > { %3078 = vmatmul.mubr.msk.bf16.gmra.mrb[4].mxu0 %vm574_vm1, %v840_v53 }
  0xf0   : > { %1000 = vmatprep.mubr.bf16.mxu0 %v4079_v0 }
  0xf7   : > { %3084 = vmatmul.mubr.msk.bf16.vlgmr.msra.gmra.mrb[0].mxu0 %vm574_vm1, %v941_v60  ;;  %v3673_v60 = vld [vmem:[#allocation7 + $0x90] ss:$8 sps:$4 sm:$0xff]  }
  0xf8   : > { %1010 = vmatprep.mubr.bf16.mxu0 %v4079_v0 }
  0xff   : > { %3085 = vmatmul.mubr.msk.bf16.gmra.mrb[4].mxu0 %vm574_vm1, %v940_v55 }
 0x100   : > { %1111 = vmatprep.mubr.bf16.mxu0 %v4079_v0 }
 0x1ca   : > { %v1002_v18 = vpop.f32.mrb[0].mxu0 }
 0x1cb   : > { %v1041_v19 = vadd.f32 %v1034_v16, %v1002_v18  ;;  %v1004_v20 = vpop.f32.mrb[1].mxu0 }
 0x1cc   : > { %v1042_v21 = vadd.f32 %v1038_v17, %v1004_v20  ;;  %v1006_v22 = vpop.f32.mrb[2].mxu0 }
 0x1cd   : > { %v1043_v23 = vadd.f32 %v1034_v16, %v1006_v22  ;;  %v1008_v24 = vpop.f32.mrb[3].mxu0  ;;  %v1049_v26 = vmax.f32 %v1041_v19, 0.0 }
 0x1ce   : > { %v1044_v25 = vadd.f32 %v1038_v17, %v1008_v24  ;;  %v1050_v28 = vmax.f32 %v1042_v21, 0.0 }
 0x1cf   : > { %v1051_v27 = vmax.f32 %v1043_v23, 0.0 }
 0x1d0   : > { %v1052_v29 = vmax.f32 %v1044_v25, 0.0 }
 0x1d1   : > { %v1059_v30 = vpack.c.bf16 %v1051_v27, %v1049_v26  ;;  %v3694_v26 = vld [vmem:[#allocation7] ss:$8 sps:$4 sm:$0xff]  }
 0x1d2   : > { %v1060_v31 = vpack.c.bf16 %v1052_v29, %v1050_v28  ;;  %v1012_v32 = vpop.f32.mrb[4].mxu0  ;;  %v3699_v28 = vld [vmem:[#allocation7 + $0x14] ss:$8 sps:$4 sm:$0xff]  }
 0x1d3   : > { %v1045_v33 = vadd.f32 %v1034_v16, %v1012_v32  ;;  %v1014_v34 = vpop.f32.mrb[5].mxu0  ;;  %v3700_v32 = vld [vmem:[#allocation7 + $0x20] ss:$8 sps:$4 sm:$0xff]  }
 0x1d4   : > { %v1046_v35 = vadd.f32 %v1038_v17, %v1014_v34  ;;  %v1016_v36 = vpop.f32.mrb[6].mxu0  ;;  %1079 = vmatprep.subr.bf16.mxu0 %v1060_v31  ;;  %v3702_v31 = vld [vmem:[#allocation7 + $0x24] ss:$8 sps:$4 sm:$0xff]   ;;  %v3703_v34 = vld [vmem:[#allocation7 + $0x30] ss:$8 sps:$4 sm:$0xff]  }
 0x1d5   : > { %v1047_v37 = vadd.f32 %v1034_v16, %v1016_v36  ;;  %v1018_v38 = vpop.f32.mrb[7].mxu0  ;;  %1080 = vmatpush1.bf16.msra.mxu0 %v1059_v30  ;;  %v1053_v40 = vmax.f32 %v1045_v33, 0.0  ;;  %v3697_v30 = vld [vmem:[#allocation7 + $0x10] ss:$8 sps:$4 sm:$0xff]   ;;  %v3705_v33 = vld [vmem:[#allocation7 + $0x34] ss:$8 sps:$4 sm:$0xff]  }
 0x1d6   : > { %v1048_v39 = vadd.f32 %v1038_v17, %v1018_v38  ;;  %v1054_v42 = vmax.f32 %v1046_v35, 0.0  ;;  %v3708_v35 = vld [vmem:[#allocation7 + $0x44] ss:$8 sps:$4 sm:$0xff]   ;;  %v3706_v36 = vld [vmem:[#allocation7 + $0x40] ss:$8 sps:$4 sm:$0xff]  }
 0x1d7   : > { %v1055_v41 = vmax.f32 %v1047_v37, 0.0  ;;  %v3711_v37 = vld [vmem:[#allocation7 + $0x54] ss:$8 sps:$4 sm:$0xff]   ;;  %v3709_v38 = vld [vmem:[#allocation7 + $0x50] ss:$8 sps:$4 sm:$0xff]  }
 0x1d8   : > { %v1056_v43 = vmax.f32 %v1048_v39, 0.0  ;;  %v3714_v39 = vld [vmem:[#allocation7 + $0x64] ss:$8 sps:$4 sm:$0xff]  }
 0x1d9   : > { %v1061_v44 = vpack.c.bf16 %v1055_v41, %v1053_v40  ;;  %v3712_v40 = vld [vmem:[#allocation7 + $0x60] ss:$8 sps:$4 sm:$0xff]   ;;  %v3717_v41 = vld [vmem:[#allocation7 + $0x74] ss:$8 sps:$4 sm:$0xff]  }
 0x1da   : > { %v1062_v45 = vpack.c.bf16 %v1056_v43, %v1054_v42  ;;  %v3715_v42 = vld [vmem:[#allocation7 + $0x70] ss:$8 sps:$4 sm:$0xff]   ;;  %v3720_v43 = vld [vmem:[#allocation7 + $0x104] ss:$8 sps:$4 sm:$0xff]  }
 0x1db   : > { %v1074_v46 = vsel %vm938_vm4, %v1061_v44, 0  ;;  %v3718_v44 = vld [vmem:[#allocation7 + $0x100] ss:$8 sps:$4 sm:$0xff]  }
 0x1dc   : > { %3087 = vmatprep.subr.msk.bf16.mxu0 %vm938_vm4, %v1062_v45  ;;  %v3723_v45 = vld [vmem:[#allocation7 + $0x114] ss:$8 sps:$4 sm:$0xff]  }
 0x1dd   : > { %1082 = vmatpush1.bf16.msra.mxu0 %v1074_v46  ;;  %v3721_v46 = vld [vmem:[#allocation7 + $0x110] ss:$8 sps:$4 sm:$0xff]  }
 0x1e0   : > { %3088 = vmatmul.mubr.msk.bf16.vlgmr.msra.gmra.mrb[8].mxu0 %vm1068_vm5, %v3653_v47  ;;  %v3726_v47 = vld [vmem:[#allocation7 + $0x124] ss:$8 sps:$4 sm:$0xff]  }
 0x1e1   : > { %2088 = vmatprep.mubr.bf16.mxu0 %v4079_v0 }
 0x2b3   : > { %v1113_v52 = vpop.f32.mrb[8].mxu0 }
 0x2b4   : > { %v1115_v53 = vpop.f32.mrb[9].mxu0 }
 0x2b5   : > { %v1117_v54 = vpop.f32.mrb[10].mxu0 }
 0x2b6   : > { %v1122_v55 = vpack.c.bf16 %v1117_v54, %v1113_v52  ;;  %v1119_v56 = vpop.f32.mrb[11].mxu0  ;;  %v3730_v52 = vld [vmem:[#allocation7 + $0x140] ss:$8 sps:$4 sm:$0xff]   ;;  %v3733_v54 = vld [vmem:[#allocation7 + $0x150] ss:$8 sps:$4 sm:$0xff]  }
 0x2b7   : > { %v1123_v57 = vpack.c.bf16 %v1119_v56, %v1115_v53  ;;  %v3735_v53 = vld [vmem:[#allocation7 + $0x154] ss:$8 sps:$4 sm:$0xff]   ;;  %v3736_v56 = vld [vmem:[#allocation7 + $0x160] ss:$8 sps:$4 sm:$0xff]  }
 0x2b9   : > { %1284 = vmatprep.mubr.bf16.mxu1 %v1123_v57  ;;  %v3741_v57 = vld [vmem:[#allocation7 + $0x174] ss:$8 sps:$4 sm:$0xff]  }
 0x2ba   : > { %1285 = vmatmul.mubr.bf16.vlgmr.msra.gmra.mrb[0].mxu1 %v1122_v55  ;;  %v3738_v55 = vld [vmem:[#allocation7 + $0x164] ss:$8 sps:$4 sm:$0xff]  }
 0x2bb   : > { %1416 = vmatpush1.bf16.msra.mxu1 %v3670_v58  ;;  %1447 = vmatprep.mubr.bf16.mxu1 %v4079_v0  ;;  %v3739_v58 = vld [vmem:[#allocation7 + $0x170] ss:$8 sps:$4 sm:$0xff]  }
 0x2bc   : > { %1417 = vmatprep.subr.bf16.mxu1 %v3675_v59  ;;  %v3744_v59 = vld [vmem:[#allocation7 + $0x184] ss:$8 sps:$4 sm:$0xff]  }
 0x2bf   : > { %1418 = vmatpush1.bf16.msra.mxu1 %v3673_v60  ;;  %v3742_v60 = vld [vmem:[#allocation7 + $0x180] ss:$8 sps:$4 sm:$0xff]  }
 0x2c0   : > { %1419 = vmatprep.subr.bf16.mxu1 %v3678_v61 }
 0x2c3   : > { %1420 = vmatpush1.bf16.msra.mxu1 %v3676_v62  ;;  %v3747_v62 = vld [vmem:[#allocation7 + $0x194] ss:$8 sps:$4 sm:$0xff]  }
 0x2c4   : > { %1421 = vmatprep.subr.bf16.mxu1 %v3681_v63  ;;  %v3745_v63 = vld [vmem:[#allocation7 + $0x190] ss:$8 sps:$4 sm:$0xff]  }
 0x2c7   : > { %1422 = vmatpush1.bf16.msra.mxu1 %v3679_v1  ;;  %v3750_v1 = vld [vmem:[#allocation7 + $0x1a4] ss:$8 sps:$4 sm:$0xff]  }
 0x2c8   : > { %1423 = vmatprep.subr.bf16.mxu1 %v3684_v2  ;;  %v3748_v2 = vld [vmem:[#allocation7 + $0x1a0] ss:$8 sps:$4 sm:$0xff]  }
 0x2cb   : > { %1424 = vmatpush1.bf16.msra.mxu1 %v3682_v3  ;;  %v3753_v3 = vld [vmem:[#allocation7 + $0x1b4] ss:$8 sps:$4 sm:$0xff]  }
 0x2cc   : > { %1425 = vmatprep.subr.bf16.mxu1 %v3687_v4  ;;  %v3751_v4 = vld [vmem:[#allocation7 + $0x1b0] ss:$8 sps:$4 sm:$0xff]  }
 0x2cf   : > { %1426 = vmatpush1.bf16.msra.mxu1 %v3685_v5  ;;  %v3756_v5 = vld [vmem:[#allocation7 + $0x1c4] ss:$8 sps:$4 sm:$0xff]  }
 0x2d0   : > { %1427 = vmatprep.subr.bf16.mxu1 %v3690_v6  ;;  %v3754_v6 = vld [vmem:[#allocation7 + $0x1c0] ss:$8 sps:$4 sm:$0xff]  }
 0x2d3   : > { %1428 = vmatpush1.bf16.msra.mxu1 %v3688_v7  ;;  %v3759_v7 = vld [vmem:[#allocation7 + $0x1d4] ss:$8 sps:$4 sm:$0xff]  }
 0x2d4   : > { %1429 = vmatprep.subr.bf16.mxu1 %v3693_v9  ;;  %v3762_v9 = vld [vmem:[#allocation7 + $0x1e4] ss:$8 sps:$4 sm:$0xff]  }
 0x2d7   : > { %1430 = vmatpush1.bf16.msra.mxu1 %v3691_v8  ;;  %v3757_v8 = vld [vmem:[#allocation7 + $0x1d0] ss:$8 sps:$4 sm:$0xff]  }
 0x2d8   : > { %1538 = vmatprep.subr.bf16.mxu1 %v3696_v10  ;;  %v3760_v10 = vld [vmem:[#allocation7 + $0x1e0] ss:$8 sps:$4 sm:$0xff]  }
 0x38d   : > { %v3270_v11 = vpop.f32.mrb[0].mxu1 }
 0x38e   : > { %v3271_v14 = vpop.f32.mrb[1].mxu1 }
 0x38f   : > { %v3272_v16 = vadd.f32 %v3271_v14, %v3270_v11  ;;  %v3273_v17 = vpop.f32.mrb[2].mxu1  ;;  %v3765_v11 = vld [vmem:[#allocation7 + $0x1f4] ss:$8 sps:$4 sm:$0xff]   ;;  %v3763_v14 = vld [vmem:[#allocation7 + $0x1f0] ss:$8 sps:$4 sm:$0xff]  }
 0x390   : > { %v3274_v18 = vpop.f32.mrb[3].mxu1 }
 0x391   : > { %v3275_v19 = vadd.f32 %v3274_v18, %v3273_v17  ;;  %v3766_v17 = vld [vmem:[#allocation7 + $0x200] ss:$8 sps:$4 sm:$0xff]   ;;  %v3771_v18 = vld [vmem:[#allocation7 + $0x214] ss:$8 sps:$4 sm:$0xff]  }
 0x393   : > { %v4414_v20 = vpack.c.bf16 %v3275_v19, %v3272_v16  ;;  %v3768_v16 = vld [vmem:[#allocation7 + $0x204] ss:$8 sps:$4 sm:$0xff]   ;;  %v3769_v19 = vld [vmem:[#allocation7 + $0x210] ss:$8 sps:$4 sm:$0xff]  }
 0x395   : > { %v1328_v21 = vshrl.u32 %v4414_v20, 16  ;;  %v1330_v22 = vshll.u32 %v4414_v20, 16  ;;  %v1599_v61 = vrot.slane %v4414_v20, 1 }
 0x397   : > { %v1332_v23 = vrot.slane %v1330_v22, 1  ;;  %v4418_v24 = vrot.slane %v1328_v21, 1  ;;  %v4420_v25 = vrot.slane %v1330_v22, 2  ;;  %v3772_v22 = vld [vmem:[#allocation7 + $0x220] ss:$8 sps:$4 sm:$0xff]  }
 0x399   : > { %v1333_v27 = vor.u32 %v1332_v23, %v1328_v21  ;;  %v1747_v29 = vor.u32 %v4420_v25, %v4418_v24  ;;  %v3774_v21 = vld [vmem:[#allocation7 + $0x224] ss:$8 sps:$4 sm:$0xff]   ;;  %v3777_v23 = vld [vmem:[#allocation7 + $0x234] ss:$8 sps:$4 sm:$0xff]   ;;  %v3781_v24 = vld [vmem:[#allocation7 + $0x250] ss:$8 sps:$4 sm:$0xff]  }
 0x39a   : > { %v3786_v25 = vld [vmem:[#allocation7 + $0x264] ss:$8 sps:$4 sm:$0xff]  }
 0x39b   : > { %1448 = vmatmul.mubr.bf16.vlgmr.msra.gmra.mrb[4].mxu1 %v1333_v27  ;;  %v3780_v27 = vld [vmem:[#allocation7 + $0x244] ss:$8 sps:$4 sm:$0xff]  }
 0x39c   : > { %1539 = vmatpush1.bf16.msra.mxu1 %v3694_v26  ;;  %1570 = vmatprep.mubr.bf16.mxu1 %v4079_v0  ;;  %v3775_v26 = vld [vmem:[#allocation7 + $0x230] ss:$8 sps:$4 sm:$0xff]  }
 0x39d   : > { %1540 = vmatprep.subr.bf16.mxu1 %v3699_v28  ;;  %v3778_v28 = vld [vmem:[#allocation7 + $0x240] ss:$8 sps:$4 sm:$0xff]  }
 0x3a0   : > { %1541 = vmatpush1.bf16.msra.mxu1 %v3697_v30  ;;  %v3783_v30 = vld [vmem:[#allocation7 + $0x254] ss:$8 sps:$4 sm:$0xff]  }
 0x3a1   : > { %1542 = vmatprep.subr.bf16.mxu1 %v3702_v31  ;;  %v3787_v31 = vld [vmem:[#allocation7 + $0x270] ss:$8 sps:$4 sm:$0xff]  }
 0x3a4   : > { %1543 = vmatpush1.bf16.msra.mxu1 %v3700_v32  ;;  %v1893_v32 = vrot.slane %v4414_v20, 2 }
 0x3a5   : > { %1544 = vmatprep.subr.bf16.mxu1 %v3705_v33  ;;  %v2022_v33 = vld [vmem:[%s4593_s6] sm:$0x3] }
 0x3a8   : > { %1545 = vmatpush1.bf16.msra.mxu1 %v3703_v34  ;;  %v2027_v34 = vrot.slane %v2022_v33, %v1033_v13 }
 0x3a9   : > { %1546 = vmatprep.subr.bf16.mxu1 %v3708_v35  ;;  %v2031_v35 = vrot.slane %v2022_v33, %v1037_v15  ;;  %v3791_v15 = vld [vmem:[#allocation8] sm:$0xff]  }
 0x3aa   : > { %v3822_v33 = vld [vmem:[#allocation10] sm:$0xff]  }
 0x3ac   : > { %1547 = vmatpush1.bf16.msra.mxu1 %v3706_v36 }
 0x3ad   : > { %1548 = vmatprep.subr.bf16.mxu1 %v3711_v37 }
 0x3b0   : > { %1549 = vmatpush1.bf16.msra.mxu1 %v3709_v38 }
 0x3b1   : > { %1550 = vmatprep.subr.bf16.mxu1 %v3714_v39 }
 0x3b4   : > { %1551 = vmatpush1.bf16.msra.mxu1 %v3712_v40 }
 0x3b5   : > { %1552 = vmatprep.subr.bf16.mxu1 %v3717_v41 }
 0x3b8   : > { %1553 = vmatpush1.bf16.msra.mxu1 %v3715_v42 }
 0x3b9   : > { %1681 = vmatprep.subr.bf16.mxu1 %v3720_v43 }
 0x3bb   : > { %1571 = vmatmul.mubr.bf16.vlgmr.msra.gmra.mrb[4].mxu1 %v4414_v20 }
 0x3bc   : > { %1682 = vmatpush1.bf16.msra.mxu1 %v3718_v44  ;;  %1713 = vmatprep.mubr.bf16.mxu1 %v4079_v0 }
 0x3bd   : > { %1683 = vmatprep.subr.bf16.mxu1 %v3723_v45 }
 0x3c0   : > { %1684 = vmatpush1.bf16.msra.mxu1 %v3721_v46 }
 0x3c1   : > { %1685 = vmatprep.subr.bf16.mxu1 %v3726_v47 }
 0x3c4   : > { %1686 = vmatpush1.bf16.msra.mxu1 %v3724_v48 }
 0x3c5   : > { %1687 = vmatprep.subr.bf16.mxu1 %v3729_v49  ;;  %v3790_v49 = vld [vmem:[#allocation8 + $0x40] sm:$0xff]  }
 0x3c8   : > { %1688 = vmatpush1.bf16.msra.mxu1 %v3727_v50  ;;  %v3792_v50 = vld [vmem:[#allocation8 + $0x48] sm:$0xff]  }
 0x3c9   : > { %1689 = vmatprep.subr.bf16.mxu1 %v3732_v51  ;;  %v3793_v51 = vld [vmem:[#allocation8 + $0x8] sm:$0xff]  }
 0x3cc   : > { %1690 = vmatpush1.bf16.msra.mxu1 %v3730_v52  ;;  %v3794_v52 = vld [vmem:[#allocation8 + $0x50] sm:$0xff]  }
 0x3cd   : > { %1691 = vmatprep.subr.bf16.mxu1 %v3735_v53  ;;  %v3795_v53 = vld [vmem:[#allocation8 + $0x10] sm:$0xff]  }
 0x3d0   : > { %1692 = vmatpush1.bf16.msra.mxu1 %v3733_v54  ;;  %v3796_v54 = vld [vmem:[#allocation8 + $0x58] sm:$0xff]  }
 0x3d1   : > { %1693 = vmatprep.subr.bf16.mxu1 %v3738_v55  ;;  %v3797_v55 = vld [vmem:[#allocation8 + $0x18] sm:$0xff]  }
 0x3d4   : > { %1694 = vmatpush1.bf16.msra.mxu1 %v3736_v56  ;;  %v3798_v56 = vld [vmem:[#allocation8 + $0x60] sm:$0xff]  }
 0x3d5   : > { %1695 = vmatprep.subr.bf16.mxu1 %v3741_v57  ;;  %v3799_v57 = vld [vmem:[#allocation8 + $0x20] sm:$0xff]  }
 0x3d8   : > { %1696 = vmatpush1.bf16.msra.mxu1 %v3739_v58  ;;  %v3800_v58 = vld [vmem:[#allocation8 + $0x68] sm:$0xff]  }
 0x3d9   : > { %1829 = vmatprep.subr.bf16.mxu1 %v3744_v59  ;;  %v3801_v59 = vld [vmem:[#allocation8 + $0x28] sm:$0xff]  }
 0x3db   : > { %1714 = vmatmul.mubr.bf16.vlgmr.msra.gmra.mrb[4].mxu1 %v1599_v61  ;;  %v3803_v61 = vld [vmem:[#allocation8 + $0x30] sm:$0xff]  }
 0x3dc   : > { %1830 = vmatpush1.bf16.msra.mxu1 %v3742_v60  ;;  %1861 = vmatprep.mubr.bf16.mxu1 %v4079_v0  ;;  %v3802_v60 = vld [vmem:[#allocation8 + $0x70] sm:$0xff]  }
 0x3dd   : > { %1831 = vmatprep.subr.bf16.mxu1 %v3747_v62  ;;  %v3804_v62 = vld [vmem:[#allocation8 + $0x78] sm:$0xff]  }
 0x3e0   : > { %1832 = vmatpush1.bf16.msra.mxu1 %v3745_v63  ;;  %v3805_v63 = vld [vmem:[#allocation8 + $0x38] sm:$0xff]  }
 0x3e1   : > { %1833 = vmatprep.subr.bf16.mxu1 %v3750_v1  ;;  %v4080_v1 = vmov 0.0  }
 0x3e4   : > { %1834 = vmatpush1.bf16.msra.mxu1 %v3748_v2  ;;  %v3807_v2 = vld [vmem:[#allocation10 + $0xc0] sm:$0xff]  }
 0x3e5   : > { %1835 = vmatprep.subr.bf16.mxu1 %v3753_v3  ;;  %v3809_v3 = vld [vmem:[#allocation10 + $0xc8] sm:$0xff]  }
 0x3e8   : > { %1836 = vmatpush1.bf16.msra.mxu1 %v3751_v4  ;;  %v3811_v4 = vld [vmem:[#allocation10 + $0xd0] sm:$0xff]  }
 0x3e9   : > { %1837 = vmatprep.subr.bf16.mxu1 %v3756_v5  ;;  %v3813_v5 = vld [vmem:[#allocation10 + $0xd8] sm:$0xff]  }
 0x3ec   : > { %1838 = vmatpush1.bf16.msra.mxu1 %v3754_v6  ;;  %v3815_v6 = vld [vmem:[#allocation10 + $0xe0] sm:$0xff]  }
 0x3ed   : > { %1839 = vmatprep.subr.bf16.mxu1 %v3759_v7  ;;  %v3817_v7 = vld [vmem:[#allocation10 + $0xe8] sm:$0xff]  }
 0x3f0   : > { %1840 = vmatpush1.bf16.msra.mxu1 %v3757_v8 }
 0x3f1   : > { %1841 = vmatprep.subr.bf16.mxu1 %v3762_v9 }
 0x3f4   : > { %1842 = vmatpush1.bf16.msra.mxu1 %v3760_v10 }
 0x3f5   : > { %1843 = vmatprep.subr.bf16.mxu1 %v3765_v11 }
 0x3f8   : > { %1844 = vmatpush1.bf16.msra.mxu1 %v3763_v14  ;;  %v3806_v14 = vld [vmem:[#allocation10 + $0x40] sm:$0xff]  }
 0x3f9   : > { %1975 = vmatprep.subr.bf16.mxu1 %v3768_v16 }
 0x3fb   : > { %1862 = vmatmul.mubr.bf16.vlgmr.msra.gmra.mrb[4].mxu1 %v1747_v29  ;;  %v3789_v29 = vld [vmem:[#allocation7 + $0x274] ss:$8 sps:$4 sm:$0xff]  }
 0x3fc   : > { %1976 = vmatpush1.bf16.msra.mxu1 %v3766_v17  ;;  %2007 = vmatprep.mubr.bf16.mxu1 %v4079_v0  ;;  %v3784_v0 = vld [vmem:[#allocation7 + $0x260] ss:$8 sps:$4 sm:$0xff]  }
 0x3fd   : > { %1977 = vmatprep.subr.bf16.mxu1 %v3771_v18  ;;  %v3808_v18 = vld [vmem:[#allocation10 + $0x48] sm:$0xff]  }
 0x400   : > { %1978 = vmatpush1.bf16.msra.mxu1 %v3769_v19  ;;  %v3810_v19 = vld [vmem:[#allocation10 + $0x50] sm:$0xff]  }
 0x401   : > { %1979 = vmatprep.subr.bf16.mxu1 %v3774_v21  ;;  %v3812_v21 = vld [vmem:[#allocation10 + $0x58] sm:$0xff]  }
 0x404   : > { %1980 = vmatpush1.bf16.msra.mxu1 %v3772_v22  ;;  %v3814_v22 = vld [vmem:[#allocation10 + $0x60] sm:$0xff]  }
 0x405   : > { %1981 = vmatprep.subr.bf16.mxu1 %v3777_v23  ;;  %v3816_v23 = vld [vmem:[#allocation10 + $0x68] sm:$0xff]  }
 0x408   : > { %1982 = vmatpush1.bf16.msra.mxu1 %v3775_v26  ;;  %v3818_v26 = vld [vmem:[#allocation10 + $0x70] sm:$0xff]  }
 0x409   : > { %1983 = vmatprep.subr.bf16.mxu1 %v3780_v27  ;;  %v3819_v27 = vld [vmem:[#allocation10 + $0xf0] sm:$0xff]  }
 0x40c   : > { %1984 = vmatpush1.bf16.msra.mxu1 %v3778_v28  ;;  %v3820_v28 = vld [vmem:[#allocation10 + $0x78] sm:$0xff]  }
 0x40d   : > { %1985 = vmatprep.subr.bf16.mxu1 %v3783_v30  ;;  %v3821_v30 = vld [vmem:[#allocation10 + $0xf8] sm:$0xff]  }
 0x410   : > { %1986 = vmatpush1.bf16.msra.mxu1 %v3781_v24 }
 0x411   : > { %1987 = vmatprep.subr.bf16.mxu1 %v3786_v25 }
 0x414   : > { %1988 = vmatpush1.bf16.msra.mxu1 %v3784_v0 }
 0x415   : > { %1989 = vmatprep.subr.bf16.mxu1 %v3789_v29 }
 0x418   : > { %1990 = vmatpush1.bf16.msra.mxu1 %v3787_v31 }
 0x419   : > { %3412 = vmatprep.subr.bf16.mxu1 %v4080_v1 }
 0x41b   : > { %2008 = vmatmul.mubr.bf16.vlgmr.msra.gmra.mrb[4].mxu1 %v1893_v32 }
 0x41c   : > { %3413 = vmatpush3.bf16.msra.mxu1 %v3807_v2  ;;  %3428 = vmatprep.mubr.msk.bf16.mxu1 %vm4081_vm8, %v4080_v1  ;;  %v3853_v2 = vld [vmem:[%s4598_s11 + $0x38] sm:$0xff]  }
 0x41d   : > { %3414 = vmatprep.subr.bf16.mxu1 %v4080_v1 }
 0x420   : > { %3415 = vmatpush3.bf16.msra.mxu1 %v3809_v3 }
 0x421   : > { %3416 = vmatprep.subr.bf16.mxu1 %v4080_v1 }
 0x424   : > { %3417 = vmatpush3.bf16.msra.mxu1 %v3811_v4 }
 0x425   : > { %3418 = vmatprep.subr.bf16.mxu1 %v4080_v1 }
 0x428   : > { %3419 = vmatpush3.bf16.msra.mxu1 %v3813_v5 }
 0x429   : > { %3420 = vmatprep.subr.bf16.mxu1 %v4080_v1 }
 0x42c   : > { %3421 = vmatpush3.bf16.msra.mxu1 %v3815_v6 }
 0x42d   : > { %3422 = vmatprep.subr.bf16.mxu1 %v4080_v1 }
 0x430   : > { %3423 = vmatpush3.bf16.msra.mxu1 %v3817_v7 }
 0x431   : > { %3424 = vmatprep.subr.bf16.mxu1 %v4080_v1 }
 0x434   : > { %3425 = vmatpush3.bf16.msra.mxu1 %v3819_v27 }
 0x435   : > { %3426 = vmatprep.subr.bf16.mxu1 %v4080_v1 }
 0x438   : > { %3427 = vmatpush3.bf16.msra.mxu1 %v3821_v30 }
 0x439   : > { %3452 = vmatprep.subr.bf16.mxu1 %v4080_v1 }
 0x4ee   : > { %v2009_v36 = vpop.f32.mrb[4].mxu1 }
 0x4ef   : > { %v2034_v37 = vadd.f32 %v2027_v34, %v2009_v36  ;;  %v2011_v38 = vpop.f32.mrb[5].mxu1  ;;  %v3823_v36 = vld [vmem:[#allocation10 + $0x8] sm:$0xff]  }
 0x4f0   : > { %v2035_v39 = vadd.f32 %v2031_v35, %v2011_v38  ;;  %v2013_v40 = vpop.f32.mrb[6].mxu1  ;;  %v3825_v38 = vld [vmem:[#allocation10 + $0x18] sm:$0xff]  }
 0x4f1   : > { %v2036_v41 = vadd.f32 %v2027_v34, %v2013_v40  ;;  %v2015_v42 = vpop.f32.mrb[7].mxu1  ;;  %v2038_v20 = vmax.f32 %v2034_v37, 0.0  ;;  %v3824_v37 = vld [vmem:[#allocation10 + $0x10] sm:$0xff]   ;;  %v3827_v40 = vld [vmem:[#allocation10 + $0x28] sm:$0xff]  }
 0x4f2   : > { %v2037_v43 = vadd.f32 %v2031_v35, %v2015_v42  ;;  %v2039_v45 = vmax.f32 %v2035_v39, 0.0  ;;  %v3826_v39 = vld [vmem:[#allocation10 + $0x20] sm:$0xff]   ;;  %v3829_v42 = vld [vmem:[#allocation10 + $0x38] sm:$0xff]  }
 0x4f3   : > { %v2040_v44 = vmax.f32 %v2036_v41, 0.0  ;;  %v3828_v41 = vld [vmem:[#allocation10 + $0x30] sm:$0xff]  }
 0x4f4   : > { %v2041_v46 = vmax.f32 %v2037_v43, 0.0  ;;  %v3830_v43 = vld [vmem:[#allocation10 + $0x80] sm:$0xff]  }
 0x4f5   : > { %v2043_v47 = vpack.c.bf16 %v2040_v44, %v2038_v20  ;;  %v3831_v20 = vld [vmem:[#allocation10 + $0x88] sm:$0xff]   ;;  %v3832_v44 = vld [vmem:[#allocation10 + $0x90] sm:$0xff]  }
 0x4f6   : > { %v2044_v48 = vpack.c.bf16 %v2041_v46, %v2039_v45  ;;  %v3833_v45 = vld [vmem:[#allocation10 + $0x98] sm:$0xff]   ;;  %v3834_v46 = vld [vmem:[#allocation10 + $0xa0] sm:$0xff]  }
 0x4f7   : > { %v2051_v13 = vsel %vm2049_vm6, %v2043_v47, 0  ;;  %v3835_v47 = vld [vmem:[#allocation10 + $0xa8] sm:$0xff]  }
 0x4f8   : > { %3185 = vmatprep.subr.msk.bf16.mxu0 %vm2049_vm6, %v2044_v48  ;;  %v3836_v48 = vld [vmem:[#allocation10 + $0xb0] sm:$0xff]  }
 0x4f9   : > { %2057 = vmatpush1.bf16.msra.mxu0 %v2051_v13  ;;  %v3838_v13 = vld [vmem:[#allocation10 + $0x100] sm:$0xff]  }
 0x4fa   : > { %3276 = vmatprep.subr.bf16.mxu0 %v3790_v49  ;;  %v3837_v49 = vld [vmem:[#allocation10 + $0xb8] sm:$0xff]  }
 0x4fc   : > { %3186 = vmatmul.mubr.msk.bf16.vlgmr.msra.gmra.mrb[12].mxu0 %vm2045_vm7, %v2042_v12 }
 0x4fd   : > { %3277 = vmatpush3.bf16.msra.mxu0 %v3791_v15  ;;  %v3839_v15 = vld [vmem:[#allocation10 + $0x108] sm:$0xff]  }
 0x4fe   : > { %3278 = vmatprep.subr.bf16.mxu0 %v3792_v50  ;;  %v3840_v50 = vld [vmem:[#allocation10 + $0x110] sm:$0xff]  }
 0x501   : > { %3279 = vmatpush3.bf16.msra.mxu0 %v3793_v51  ;;  %v3841_v51 = vld [vmem:[#allocation10 + $0x118] sm:$0xff]  }
 0x502   : > { %3280 = vmatprep.subr.bf16.mxu0 %v3794_v52  ;;  %v3842_v52 = vld [vmem:[#allocation10 + $0x120] sm:$0xff]  }
 0x505   : > { %3281 = vmatpush3.bf16.msra.mxu0 %v3795_v53  ;;  %v3843_v53 = vld [vmem:[#allocation10 + $0x128] sm:$0xff]  }
 0x506   : > { %3282 = vmatprep.subr.bf16.mxu0 %v3796_v54  ;;  %v3844_v54 = vld [vmem:[#allocation10 + $0x130] sm:$0xff]  }
 0x509   : > { %3283 = vmatpush3.bf16.msra.mxu0 %v3797_v55  ;;  %v3845_v55 = vld [vmem:[#allocation10 + $0x138] sm:$0xff]  }
 0x50a   : > { %3284 = vmatprep.subr.bf16.mxu0 %v3798_v56 }
 0x50d   : > { %3285 = vmatpush3.bf16.msra.mxu0 %v3799_v57  ;;  %v3846_v57 = vld [vmem:[%s4598_s11] sm:$0xff]  }
 0x50e   : > { %3286 = vmatprep.subr.bf16.mxu0 %v3800_v58  ;;  %v3847_v58 = vld [vmem:[%s4598_s11 + $0x8] sm:$0xff]  }
 0x511   : > { %3287 = vmatpush3.bf16.msra.mxu0 %v3801_v59  ;;  %v3848_v59 = vld [vmem:[%s4598_s11 + $0x10] sm:$0xff]  }
 0x512   : > { %3288 = vmatprep.subr.bf16.mxu0 %v3802_v60  ;;  %v3849_v60 = vld [vmem:[%s4598_s11 + $0x18] sm:$0xff]  }
 0x515   : > { %3289 = vmatpush3.bf16.msra.mxu0 %v3803_v61  ;;  %v3850_v61 = vld [vmem:[%s4598_s11 + $0x20] sm:$0xff]  }
 0x516   : > { %3290 = vmatprep.subr.bf16.mxu0 %v3804_v62  ;;  %v3851_v62 = vld [vmem:[%s4598_s11 + $0x28] sm:$0xff]  }
 0x519   : > { %3291 = vmatpush3.bf16.msra.mxu0 %v3805_v63  ;;  %v3852_v63 = vld [vmem:[%s4598_s11 + $0x30] sm:$0xff]  }
 0x51a   : > { %3352 = vmatprep.subr.bf16.mxu0 %v4080_v1 }
 0x5cf   : > { %v2090_v8 = vpop.f32.mrb[12].mxu0 }
 0x5d0   : > { %v2092_v9 = vpop.f32.mrb[13].mxu0  ;;  %v2097_v16 = vpack.c.bf16 %v2090_v8, %v2090_v8 }
 0x5d1   : > { %v2098_v10 = vpack.c.bf16 %v2092_v9, %v2092_v9  ;;  %v2094_v11 = vpop.f32.mrb[14].mxu0 }
 0x5d2   : > { %v2095_v17 = vpop.f32.mrb[15].mxu0 }
 0x5d3   : > { %2259 = vmatprep.mubr.bf16.mxu0 %v2098_v10 }
 0x5d4   : > { %2260 = vmatmul.mubr.bf16.vlgmr.msra.gmra.mrb[16].mxu0 %v2097_v16 }
 0x5d5   : > { %3353 = vmatpush3.bf16.msra.mxu0 %v3806_v14  ;;  %3368 = vmatprep.mubr.msk.bf16.mxu0 %vm4081_vm8, %v4080_v1 }
 0x5d6   : > { %3354 = vmatprep.subr.bf16.mxu0 %v4080_v1 }
 0x5d9   : > { %3355 = vmatpush3.bf16.msra.mxu0 %v3808_v18 }
 0x5da   : > { %3356 = vmatprep.subr.bf16.mxu0 %v4080_v1 }
 0x5dd   : > { %3357 = vmatpush3.bf16.msra.mxu0 %v3810_v19 }
 0x5de   : > { %3358 = vmatprep.subr.bf16.mxu0 %v4080_v1 }
 0x5e1   : > { %3359 = vmatpush3.bf16.msra.mxu0 %v3812_v21 }
 0x5e2   : > { %3360 = vmatprep.subr.bf16.mxu0 %v4080_v1 }
 0x5e5   : > { %3361 = vmatpush3.bf16.msra.mxu0 %v3814_v22 }
 0x5e6   : > { %3362 = vmatprep.subr.bf16.mxu0 %v4080_v1 }
 0x5e9   : > { %3363 = vmatpush3.bf16.msra.mxu0 %v3816_v23 }
 0x5ea   : > { %3364 = vmatprep.subr.bf16.mxu0 %v4080_v1 }
 0x5ed   : > { %3365 = vmatpush3.bf16.msra.mxu0 %v3818_v26 }
 0x5ee   : > { %3366 = vmatprep.subr.bf16.mxu0 %v4080_v1 }
 0x5f1   : > { %3367 = vmatpush3.bf16.msra.mxu0 %v3820_v28  ;;  %v2806_v28 = vld [vmem:[%s4597_s10] sm:$0x1] }
 0x5f2   : > { %3372 = vmatprep.subr.bf16.mxu0 %v4080_v1 }
 0x6a7   : > { %v3292_v24 = vpop.f32.mrb[16].mxu0 }
 0x6a8   : > { %v3293_v25 = vpop.f32.mrb[17].mxu0 }
 0x6a9   : > { %v3294_v0 = vadd.f32 %v3293_v25, %v3292_v24  ;;  %v3295_v29 = vpop.f32.mrb[18].mxu0 }
 0x6aa   : > { %v3296_v31 = vpop.f32.mrb[19].mxu0 }
 0x6ab   : > { %v4466_v32 = vpack.c.bf16 %v3294_v0, %v3294_v0 }
 0x6ad   : > { %v2302_v34 = vshrl.u32 %v4466_v32, 16  ;;  %v2499_v12 = vrot.slane %v4466_v32, 1  ;;  %v2715_v56 = vrot.slane %v4466_v32, 2 }
 0x6af   : > { %3369 = vmatmul.mubr.bf16.vlgmr.msra.gmra.mrb[20].mxu0 %v2302_v34  ;;  %v2607_v35 = vrot.slane %v2302_v34, 1 }
 0x6b0   : > { %3373 = vmatpush3.bf16.msra.mxu0 %v3822_v33  ;;  %3388 = vmatprep.mubr.msk.bf16.mxu0 %vm4081_vm8, %v4080_v1  ;;  %v2826_v33 = vld [vmem:[%s4642_s30] sm:$0x1] }
 0x6b1   : > { %3429 = vmatmul.mubr.bf16.vlgmr.msra.gmra.mrb[8].mxu1 %v2607_v35  ;;  %3374 = vmatprep.subr.bf16.mxu0 %v4080_v1 }
 0x6b2   : > { %3468 = vmatprep.mubr.msk.bf16.mxu1 %vm4081_vm8, %v4080_v1  ;;  %3453 = vmatpush3.bf16.msra.mxu1 %v3846_v57 }
 0x6b3   : > { %3454 = vmatprep.subr.bf16.mxu1 %v4080_v1 }
 0x6b4   : > { %3375 = vmatpush3.bf16.msra.mxu0 %v3823_v36 }
 0x6b5   : > { %3376 = vmatprep.subr.bf16.mxu0 %v4080_v1 }
 0x6b6   : > { %3455 = vmatpush3.bf16.msra.mxu1 %v3847_v58 }
 0x6b7   : > { %3456 = vmatprep.subr.bf16.mxu1 %v4080_v1 }
 0x6b8   : > { %3377 = vmatpush3.bf16.msra.mxu0 %v3824_v37 }
 0x6b9   : > { %3378 = vmatprep.subr.bf16.mxu0 %v4080_v1 }
 0x6ba   : > { %3457 = vmatpush3.bf16.msra.mxu1 %v3848_v59 }
 0x6bb   : > { %3458 = vmatprep.subr.bf16.mxu1 %v4080_v1 }
 0x6bc   : > { %3379 = vmatpush3.bf16.msra.mxu0 %v3825_v38 }
 0x6bd   : > { %3380 = vmatprep.subr.bf16.mxu0 %v4080_v1 }
 0x6be   : > { %3459 = vmatpush3.bf16.msra.mxu1 %v3849_v60 }
 0x6bf   : > { %3460 = vmatprep.subr.bf16.mxu1 %v4080_v1 }
 0x6c0   : > { %3381 = vmatpush3.bf16.msra.mxu0 %v3826_v39 }
 0x6c1   : > { %3382 = vmatprep.subr.bf16.mxu0 %v4080_v1 }
 0x6c2   : > { %3461 = vmatpush3.bf16.msra.mxu1 %v3850_v61 }
 0x6c3   : > { %3462 = vmatprep.subr.bf16.mxu1 %v4080_v1 }
 0x6c4   : > { %3383 = vmatpush3.bf16.msra.mxu0 %v3827_v40 }
 0x6c5   : > { %3384 = vmatprep.subr.bf16.mxu0 %v4080_v1 }
 0x6c6   : > { %3463 = vmatpush3.bf16.msra.mxu1 %v3851_v62 }
 0x6c7   : > { %3464 = vmatprep.subr.bf16.mxu1 %v4080_v1 }
 0x6c8   : > { %3385 = vmatpush3.bf16.msra.mxu0 %v3828_v41 }
 0x6c9   : > { %3386 = vmatprep.subr.bf16.mxu0 %v4080_v1 }
 0x6ca   : > { %3465 = vmatpush3.bf16.msra.mxu1 %v3852_v63 }
 0x6cb   : > { %3466 = vmatprep.subr.bf16.mxu1 %v4080_v1 }
 0x6cc   : > { %3387 = vmatpush3.bf16.msra.mxu0 %v3829_v42 }
 0x6cd   : > { %3392 = vmatprep.subr.bf16.mxu0 %v4080_v1 }
 0x6ce   : > { %3467 = vmatpush3.bf16.msra.mxu1 %v3853_v2 }
 0x6cf   : > { %3389 = vmatmul.mubr.bf16.vlgmr.msra.gmra.mrb[24].mxu0 %v4466_v32 }
 0x6d0   : > { %3393 = vmatpush3.bf16.msra.mxu0 %v3830_v43  ;;  %3408 = vmatprep.mubr.msk.bf16.mxu0 %vm4081_vm8, %v4080_v1 }
 0x6d1   : > { %3394 = vmatprep.subr.bf16.mxu0 %v4080_v1 }
 0x6d4   : > { %3395 = vmatpush3.bf16.msra.mxu0 %v3831_v20 }
 0x6d5   : > { %3396 = vmatprep.subr.bf16.mxu0 %v4080_v1 }
 0x6d8   : > { %3397 = vmatpush3.bf16.msra.mxu0 %v3832_v44 }
 0x6d9   : > { %3398 = vmatprep.subr.bf16.mxu0 %v4080_v1 }
 0x6dc   : > { %3399 = vmatpush3.bf16.msra.mxu0 %v3833_v45 }
 0x6dd   : > { %3400 = vmatprep.subr.bf16.mxu0 %v4080_v1 }
 0x6e0   : > { %3401 = vmatpush3.bf16.msra.mxu0 %v3834_v46 }
 0x6e1   : > { %3402 = vmatprep.subr.bf16.mxu0 %v4080_v1 }
 0x6e4   : > { %3403 = vmatpush3.bf16.msra.mxu0 %v3835_v47 }
 0x6e5   : > { %3404 = vmatprep.subr.bf16.mxu0 %v4080_v1 }
 0x6e8   : > { %3405 = vmatpush3.bf16.msra.mxu0 %v3836_v48 }
 0x6e9   : > { %3406 = vmatprep.subr.bf16.mxu0 %v4080_v1 }
 0x6ec   : > { %3407 = vmatpush3.bf16.msra.mxu0 %v3837_v49 }
 0x6ed   : > { %3432 = vmatprep.subr.bf16.mxu0 %v4080_v1 }
 0x6ef   : > { %3409 = vmatmul.mubr.bf16.vlgmr.msra.gmra.mrb[28].mxu0 %v2499_v12 }
 0x6f0   : > { %3433 = vmatpush3.bf16.msra.mxu0 %v3838_v13  ;;  %3448 = vmatprep.mubr.msk.bf16.mxu0 %vm4081_vm8, %v4080_v1 }
 0x6f1   : > { %3434 = vmatprep.subr.bf16.mxu0 %v4080_v1 }
 0x6f4   : > { %3435 = vmatpush3.bf16.msra.mxu0 %v3839_v15 }
 0x6f5   : > { %3436 = vmatprep.subr.bf16.mxu0 %v4080_v1 }
 0x6f8   : > { %3437 = vmatpush3.bf16.msra.mxu0 %v3840_v50 }
 0x6f9   : > { %3438 = vmatprep.subr.bf16.mxu0 %v4080_v1 }
 0x6fc   : > { %3439 = vmatpush3.bf16.msra.mxu0 %v3841_v51 }
 0x6fd   : > { %3440 = vmatprep.subr.bf16.mxu0 %v4080_v1 }
 0x700   : > { %3441 = vmatpush3.bf16.msra.mxu0 %v3842_v52 }
 0x701   : > { %3442 = vmatprep.subr.bf16.mxu0 %v4080_v1 }
 0x704   : > { %3443 = vmatpush3.bf16.msra.mxu0 %v3843_v53 }
 0x705   : > { %3444 = vmatprep.subr.bf16.mxu0 %v4080_v1 }
 0x708   : > { %3445 = vmatpush3.bf16.msra.mxu0 %v3844_v54 }
 0x709   : > { %3446 = vmatprep.subr.bf16.mxu0 %v4080_v1 }
 0x70c   : > { %3447 = vmatpush3.bf16.msra.mxu0 %v3845_v55 }
 0x70f   : > { %3449 = vmatmul.mubr.bf16.vlgmr.msra.gmra.mrb[32].mxu0 %v2715_v56 }
 0x782   : > { %v2387_v3 = vpop.f32.mrb[20].mxu0 }
 0x783   : > { %v3370_v4 = vpop.f32.mrb[21].mxu0 }
 0x784   : > { %v2390_v5 = vpop.f32.mrb[22].mxu0  ;;  %v2691_v6 = vpop.f32.mrb[8].mxu1 }
 0x785   : > { %v3371_v7 = vpop.f32.mrb[23].mxu0  ;;  %v3430_v8 = vpop.f32.mrb[9].mxu1 }
 0x786   : > { %v2694_v9 = vpop.f32.mrb[10].mxu1 }
 0x787   : > { %v3431_v10 = vpop.f32.mrb[11].mxu1 }
 0x7a2   : > { %v2475_v11 = vpop.f32.mrb[24].mxu0 }
 0x7a3   : > { %v2476_v14 = vadd.f32 %v2475_v11, %v2387_v3  ;;  %v3390_v16 = vpop.f32.mrb[25].mxu0 }
 0x7a4   : > { %v2478_v17 = vpop.f32.mrb[26].mxu0 }
 0x7a5   : > { %v3391_v18 = vpop.f32.mrb[27].mxu0 }
 0x7c2   : > { %v2583_v19 = vpop.f32.mrb[28].mxu0 }
 0x7c3   : > { %v2589_v1 = vadd.f32 %v2583_v19, %v2476_v14  ;;  %v3410_v21 = vpop.f32.mrb[29].mxu0 }
 0x7c4   : > { %v2586_v22 = vpop.f32.mrb[30].mxu0 }
 0x7c5   : > { %v3411_v23 = vpop.f32.mrb[31].mxu0  ;;  %v2697_v26 = vadd.f32 %v2691_v6, %v2589_v1 }
 0x7e2   : > { %v2799_v27 = vpop.f32.mrb[32].mxu0 }
 0x7e3   : > { %v2805_v30 = vadd.f32 %v2799_v27, %v2697_v26  ;;  %v3450_v24 = vpop.f32.mrb[33].mxu0 }
 0x7e4   : > { %v2802_v25 = vpop.f32.mrb[34].mxu0 }
 0x7e5   : > { %v2807_v0 = vadd.f32 %v2806_v28, %v2805_v30  ;;  %v3451_v29 = vpop.f32.mrb[35].mxu0 }
 0x7e7   : > { %v2808_v31 = vmax.f32 %v2807_v0, 0.0 }
 0x7e9   : > { %v2809_v32 = vpack.c.bf16 %v2808_v31, %v2808_v31 }
 0x7eb   : > { %3469 = vmatmul.mubr.bf16.vlgmr.msra.gmra.mrb[12].mxu1 %v2809_v32 }
 0x8be   : > { %v2909_v34 = vpop.f32.mrb[12].mxu1 }
 0x8bf   : > { %v2910_v35 = vadd.f32 %v2909_v34, %v2826_v33  ;;  %v3470_v36 = vpop.f32.mrb[13].mxu1 }
 0x8c0   : > { %v2912_v37 = vpop.f32.mrb[14].mxu1 }
 0x8c1   : > { %2915 = vst [vmem:[%s506_s22] sm:$0x1] %v2910_v35  ;;  %v3471_v38 = vpop.f32.mrb[15].mxu1 }
 0x8c2   : > { %4007 = shalt.err (!%p4004_p0)
}
 0x8c3   : > { %s4008_s13 = scalar_lea.hbm %s4545_s16, 16  ;;  %s4012_s21 = scalar_lea.hbm %s4644_s24, 32 }
 0x8c4   : > { %p4009_p10 = scmp.ne.s32.totalorder %s4545_s16, %s4008_s13  ;;  %p4013_p4 = scmp.lt.u32.totalorder %s4545_s16, %s4644_s24 }
 0x8c5   : > { %p4014_p12 = scmp.lt.u32.totalorder %s4012_s21, %s4008_s13  ;;  %p4016_p8 = scmp.lt.u32.totalorder %s4008_s13, %s4545_s16 }
 0x8c6   : > { %p4010_p2 = pnand %p4009_p10, %p4645_p11 }
 0x8c7   : > { %p4015_p7 = por %p4014_p12, %p4013_p4 }
 0x8c8   : > { %p4011_p3 = pneg %p4010_p2 }
 0x8c9   : > { %p4017_p13 = por %p4016_p8, %p4015_p7 }
 0x8cb   : > { %p4018_p1 = pnand %p4017_p13, %p4011_p3 }
 0x8cd   : > { %4021 = shalt.err (!%p4018_p1)
}
 0x8ce   : > { %3540 = dma.vmem_to_hbm [thread:$0]  (%p4645_p11), %s4547_s25, 16, %s4545_s16, %s2917_s14  }
 0x8cf PF: > { %s4646_s30 = sld [smem:[#allocation18_spill]]  ;;  %s4647_s19 = sld [smem:[#allocation16_spill]] }
 0x8d0   : > { %s4648_s22 = sld [smem:[#allocation22_spill]] }
 0x8d5   : > { %p3572_p6 = scmp.ge.s32.totalorder %s4646_s30, 2  ;;  %s2941_s20 = sand.u32 1, %s4647_s19  }
 0x8d6   : > { %p4649_p9 = scmp.ne.s32.totalorder %s4648_s22, 0  ;;  %s2942_s23 = scalar_lea.sflag [#allocation4], %s2941_s20 }
 0x8d8   : > { %p3559_p5 = pnand %p3572_p6, %p4649_p9 }
 0x8da   : > { %4051 = dma.done.wait (!%p3559_p5), %s2942_s23, 16  }
 0x8db   : > { %4053 = vsyncadd (!%p3559_p5), %s2942_s23, 4294967280  ;;  %s4650_s28 = sld [smem:[#allocation19_spill]]  ;;  %s4651_s29 = sld [smem:[#allocation17_spill]] }
 0x8dc   : > { %s4652_s27 = sld [smem:[#allocation20_spill]]  ;;  %s4653_s25 = smov %s4060_s26 }
 0x8e1   : > { %p26_p0 = scmp.ge.s32.totalorder %s4650_s28, 4   ;;  %s4654_s26 = smov %s4651_s29 }
 0x8e3   :  { %28 = sbr.rel (!%p26_p0) target bundleno = 11 (0xb), region = 140 }
 0x8ea   :  { %2946 = vsyncpa [#allocation3], 1 }
 0x8eb   :  { %2948 = vsyncpa [#allocation3 + $0x1], 1 }
 0x8ec   :  { %2949 = vsyncpa [#allocation6], 1 }
 0x8ed   :  { %2950 = vsyncpa [#allocation9], 1 }
 0x8ee   :  { %2951 = vsyncpa [#allocation4], 1 }
 0x8ef   :  { %2953 = vsyncpa [#allocation4 + $0x1], 1 }

</bundles_post_ra>
